<compile_context>
chip_gen: v7x
topology: tpu7x:2x2x1
jax: 0.10.0
libtpu: 0.0.40
codegen_flags: <defaults>
</compile_context>

<pallas_src>
import functools

import jax
import jax.numpy as jnp
from jax.experimental import pallas as pl
from jax.experimental.pallas import tpu as pltpu

NEG_SLOPE = 0.01  # nn.LeakyReLU default


def classifier_kernel(x_ref, w1_ref, b1_ref, w2_ref, b2_ref,
                      w3_ref, b3_ref, w4_ref, b4_ref, o_ref):
    # Layer 1: Linear(num_features, 1024) + LeakyReLU   (bf16 epilogue)
    h = jnp.dot(x_ref[...], w1_ref[...], preferred_element_type=jnp.float32)
    h = h.astype(jnp.bfloat16) + b1_ref[...]
    h = jnp.maximum(h, NEG_SLOPE * h)          # LeakyReLU == max(h, 0.01*h)
    # Dropout(0.3): identity in eval mode.

    # Layer 2: Linear(1024, 512) + ReLU                 (bf16 epilogue)
    h = jnp.dot(h, w2_ref[...], preferred_element_type=jnp.float32)
    h = h.astype(jnp.bfloat16) + b2_ref[...]
    h = jnp.maximum(h, 0.0)

    # Layer 3: Linear(512, 431) + ReLU  (431 padded to 512 lanes, bf16 epilogue)
    h = jnp.dot(h, w3_ref[...], preferred_element_type=jnp.float32)
    h = h.astype(jnp.bfloat16) + b3_ref[...]
    h = jnp.maximum(h, 0.0)
    # Dropout(0.5): identity in eval mode.

    # Layer 4: Linear(431, num_classes) + Sigmoid (num_classes padded to 128)
    z = jnp.dot(h, w4_ref[...], preferred_element_type=jnp.float32) + b4_ref[...]
    o_ref[...] = jax.nn.sigmoid(z)


def _round_up(n, m):
    return ((n + m - 1) // m) * m


def _choose_batch_tiling(batch, tb_max):
    """Pick (tb, b_pad, n_steps) with <8 padding rows per tile and >=2 grid
    steps when that keeps tb >= 128 (so v7x can use both TensorCores)."""
    b8 = _round_up(batch, 8)
    tb_max = max(8, _round_up(int(tb_max), 8))
    n_steps = -(-b8 // tb_max)                 # cdiv
    if n_steps == 1 and b8 >= 256:
        n_steps = 2                            # keep both v7x TCs busy
    tb = _round_up(-(-b8 // n_steps), 8)       # adaptive tile, 8-row granularity
    b_pad = n_steps * tb
    return tb, b_pad, n_steps


_PARAM_ORDER = ("w1", "b1", "w2", "b2", "w3", "b3", "w4", "b4")


@functools.partial(jax.jit, static_argnames=("num_classes", "tb"))
def classifier_forward(x, params, num_classes, tb=512):
    """x: (B, num_features) f32.

    params: dict of padded (in, out) bf16 weights, (1, out) bf16 biases
    (layers 1-3) and a (1, out_pad) f32 bias for layer 4.
    """
    B, F = x.shape
    out_pad = params["w4"].shape[1]

    tile_b, b_pad, n_steps = _choose_batch_tiling(B, tb)

    x = x.astype(jnp.bfloat16)                 # halve x DMA bytes
    if b_pad != B:
        x = jnp.pad(x, ((0, b_pad - B), (0, 0)))

    batch_map = lambda i: (i, 0)
    const_map = lambda i: (0, 0)               # weights/biases resident

    in_specs = [pl.BlockSpec((tile_b, F), batch_map)]
    in_specs += [
        pl.BlockSpec(params[name].shape, const_map, pipeline_mode=pl.Buffered(1))
        for name in _PARAM_ORDER
    ]
    out_spec = pl.BlockSpec((tile_b, out_pad), batch_map)

    flops = 2 * b_pad * (F * 1024 + 1024 * 512 + 512 * 512 + 512 * out_pad)
    param_bytes = sum(int(params[n].size) * params[n].dtype.itemsize
                      for n in _PARAM_ORDER)
    bytes_accessed = (b_pad * F * 2) + param_bytes + (b_pad * out_pad * 4)
    cost = pl.CostEstimate(flops=flops,
                           transcendentals=b_pad * out_pad,
                           bytes_accessed=bytes_accessed)

    out = pl.pallas_call(
        classifier_kernel,
        out_shape=jax.ShapeDtypeStruct((b_pad, out_pad), jnp.float32),
        grid=(n_steps,),
        in_specs=in_specs,
        out_specs=out_spec,
        compiler_params=pltpu.CompilerParams(
            dimension_semantics=("parallel",),
            vmem_limit_bytes=32 << 20,
        ),
        cost_estimate=cost,
    )(x, *(params[n] for n in _PARAM_ORDER))
    return out[:B, :num_classes]


def init_params(key, num_features, num_classes):
    """Deterministic init matching nn.Linear's U(-1/sqrt(in), 1/sqrt(in)).

    Returns (raw f32 params for the reference, padded params for the kernel).
    Kernel weights are (in, out) bf16 (layer-3 out 431 -> 512, layer-4 out
    num_classes -> 128 lane-padded); biases for layers 1-3 are bf16, b4 is f32.
    """
    dims = [(num_features, 1024), (1024, 512), (512, 431), (431, num_classes)]
    keys = jax.random.split(key, 2 * len(dims))
    raw = {}
    for i, (din, dout) in enumerate(dims):
        bound = 1.0 / jnp.sqrt(din)
        raw[f"w{i+1}"] = jax.random.uniform(keys[2 * i], (din, dout),
                                            jnp.float32, -bound, bound)
        raw[f"b{i+1}"] = jax.random.uniform(keys[2 * i + 1], (1, dout),
                                            jnp.float32, -bound, bound)

    h3_pad = _round_up(431, 128)            # 512
    nc_pad = _round_up(num_classes, 128)    # >= 128

    padded = {}
    padded["w1"] = raw["w1"].astype(jnp.bfloat16)
    padded["b1"] = raw["b1"].astype(jnp.bfloat16)
    padded["w2"] = raw["w2"].astype(jnp.bfloat16)
    padded["b2"] = raw["b2"].astype(jnp.bfloat16)
    padded["w3"] = jnp.pad(raw["w3"], ((0, 0), (0, h3_pad - 431))).astype(jnp.bfloat16)
    padded["b3"] = jnp.pad(raw["b3"], ((0, 0), (0, h3_pad - 431))).astype(jnp.bfloat16)
    padded["w4"] = jnp.pad(raw["w4"], ((0, h3_pad - 431),
                                       (0, nc_pad - num_classes))).astype(jnp.bfloat16)
    padded["b4"] = jnp.pad(raw["b4"], ((0, 0), (0, nc_pad - num_classes)))
    return raw, padded


def reference_forward(x, raw):
    """Plain-JAX reference (eval-mode dropout == identity) using the same
    bf16-rounded weights the kernel sees; activations stay f32 here, so the
    comparison tolerance (atol=2e-2) covers the kernel's bf16 epilogue."""
    w1 = raw["w1"].astype(jnp.bfloat16).astype(jnp.float32)
    w2 = raw["w2"].astype(jnp.bfloat16).astype(jnp.float32)
    w3 = raw["w3"].astype(jnp.bfloat16).astype(jnp.float32)
    w4 = raw["w4"].astype(jnp.bfloat16).astype(jnp.float32)
    h = x @ w1 + raw["b1"]
    h = jnp.where(h > 0, h, NEG_SLOPE * h)
    h = jnp.maximum(h @ w2 + raw["b2"], 0.0)
    h = jnp.maximum(h @ w3 + raw["b3"], 0.0)
    return jax.nn.sigmoid(h @ w4 + raw["b4"])


if __name__ == "__main__":
    num_features = 64
    num_classes = 10

    key = jax.random.PRNGKey(0)
    kx, kp, kx2 = jax.random.split(key, 3)
    raw, padded = init_params(kp, num_features, num_classes)

    # Small batch (single grid step, tb collapses to 8 rows).
    batch = 8
    x = jax.random.normal(kx, (batch, num_features), jnp.float32)
    out = jax.block_until_ready(classifier_forward(x, padded, num_classes))
    ref = reference_forward(x, raw)
    assert out.shape == (batch, num_classes), out.shape
    assert jnp.allclose(out, ref, atol=2e-2), float(jnp.abs(out - ref).max())

    # Larger ragged batch: exercises the multi-step batch grid + adaptive
    # tiling (tb=128 cap -> 3 steps of 88 rows, only 4 padding rows total).
    batch2 = 260
    x2 = jax.random.normal(kx2, (batch2, num_features), jnp.float32)
    out2 = jax.block_until_ready(classifier_forward(x2, padded, num_classes, tb=128))
    ref2 = reference_forward(x2, raw)
    assert out2.shape == (batch2, num_classes), out2.shape
    assert jnp.allclose(out2, ref2, atol=2e-2), float(jnp.abs(out2 - ref2).max())

    print("KERNEL_OK")
</pallas_src>

<mosaic_0001>
module attributes {stable_mosaic.version = 11 : i64} {
  func.func @classifier_kernel(%arg0: i32, %arg1: memref<8x64xbf16, #tpu.memory_space<vmem>>, %arg2: memref<64x1024xbf16, #tpu.memory_space<vmem>>, %arg3: memref<1x1024xbf16, #tpu.memory_space<vmem>>, %arg4: memref<1024x512xbf16, #tpu.memory_space<vmem>>, %arg5: memref<1x512xbf16, #tpu.memory_space<vmem>>, %arg6: memref<512x512xbf16, #tpu.memory_space<vmem>>, %arg7: memref<1x512xbf16, #tpu.memory_space<vmem>>, %arg8: memref<512x128xbf16, #tpu.memory_space<vmem>>, %arg9: memref<1x128xf32, #tpu.memory_space<vmem>>, %arg10: memref<8x128xf32, #tpu.memory_space<vmem>>) attributes {dimension_semantics = [#tpu.dimension_semantics<parallel>], iteration_bounds = array<i64: 1>, scalar_prefetch = 0 : i64, scratch_operands = 0 : i64, tpu.core_type = #tpu.core_type<tc>, window_params = [{transform_indices = @transform_0, window_bounds = array<i64: 8, 64>}, {pipeline_mode = #tpu.pipeline_mode<synchronous>, transform_indices = @transform_1, window_bounds = array<i64: 64, 1024>}, {pipeline_mode = #tpu.pipeline_mode<synchronous>, transform_indices = @transform_2, window_bounds = array<i64: 1, 1024>}, {pipeline_mode = #tpu.pipeline_mode<synchronous>, transform_indices = @transform_3, window_bounds = array<i64: 1024, 512>}, {pipeline_mode = #tpu.pipeline_mode<synchronous>, transform_indices = @transform_4, window_bounds = array<i64: 1, 512>}, {pipeline_mode = #tpu.pipeline_mode<synchronous>, transform_indices = @transform_5, window_bounds = array<i64: 512, 512>}, {pipeline_mode = #tpu.pipeline_mode<synchronous>, transform_indices = @transform_6, window_bounds = array<i64: 1, 512>}, {pipeline_mode = #tpu.pipeline_mode<synchronous>, transform_indices = @transform_7, window_bounds = array<i64: 512, 128>}, {pipeline_mode = #tpu.pipeline_mode<synchronous>, transform_indices = @transform_8, window_bounds = array<i64: 1, 128>}, {transform_indices = @transform_9, window_bounds = array<i64: 8, 128>}]} {
    %c0 = arith.constant 0 : index
    %c0_0 = arith.constant 0 : index
    %0 = vector.load %arg1[%c0, %c0_0] : memref<8x64xbf16, #tpu.memory_space<vmem>>, vector<8x64xbf16>
    %c0_1 = arith.constant 0 : index
    %c0_2 = arith.constant 0 : index
    %1 = vector.load %arg2[%c0_1, %c0_2] : memref<64x1024xbf16, #tpu.memory_space<vmem>>, vector<64x1024xbf16>
    %cst = arith.constant dense<0.000000e+00> : vector<8x1024xf32>
    %2 = tpu.matmul %0, %1, %cst {dimension_numbers = #tpu.dot_dimension_numbers<[1], [0], [0], [1], [0, 0, 1, 1], [], []>} : vector<8x64xbf16>, vector<64x1024xbf16>, vector<8x1024xf32> -> vector<8x1024xf32>
    %3 = arith.truncf %2 : vector<8x1024xf32> to vector<8x1024xbf16>
    %c0_3 = arith.constant 0 : index
    %c0_4 = arith.constant 0 : index
    %4 = vector.load %arg3[%c0_3, %c0_4] : memref<1x1024xbf16, #tpu.memory_space<vmem>>, vector<1x1024xbf16>
    %5 = vector.broadcast %4 : vector<1x1024xbf16> to vector<8x1024xbf16>
    %6 = arith.addf %3, %5 : vector<8x1024xbf16>
    %cst_5 = arith.constant 1.000980e-02 : bf16
    %7 = vector.broadcast %cst_5 : bf16 to vector<8x1024xbf16>
    %8 = arith.mulf %7, %6 : vector<8x1024xbf16>
    %9 = arith.maximumf %6, %8 : vector<8x1024xbf16>
    %c0_6 = arith.constant 0 : index
    %c0_7 = arith.constant 0 : index
    %10 = vector.load %arg4[%c0_6, %c0_7] : memref<1024x512xbf16, #tpu.memory_space<vmem>>, vector<1024x512xbf16>
    %cst_8 = arith.constant dense<0.000000e+00> : vector<8x512xf32>
    %11 = tpu.matmul %9, %10, %cst_8 {dimension_numbers = #tpu.dot_dimension_numbers<[1], [0], [0], [1], [0, 0, 1, 1], [], []>} : vector<8x1024xbf16>, vector<1024x512xbf16>, vector<8x512xf32> -> vector<8x512xf32>
    %12 = arith.truncf %11 : vector<8x512xf32> to vector<8x512xbf16>
    %c0_9 = arith.constant 0 : index
    %c0_10 = arith.constant 0 : index
    %13 = vector.load %arg5[%c0_9, %c0_10] : memref<1x512xbf16, #tpu.memory_space<vmem>>, vector<1x512xbf16>
    %14 = vector.broadcast %13 : vector<1x512xbf16> to vector<8x512xbf16>
    %15 = arith.addf %12, %14 : vector<8x512xbf16>
    %cst_11 = arith.constant 0.000000e+00 : bf16
    %16 = vector.broadcast %cst_11 : bf16 to vector<8x512xbf16>
    %17 = arith.maximumf %15, %16 : vector<8x512xbf16>
    %c0_12 = arith.constant 0 : index
    %c0_13 = arith.constant 0 : index
    %18 = vector.load %arg6[%c0_12, %c0_13] : memref<512x512xbf16, #tpu.memory_space<vmem>>, vector<512x512xbf16>
    %cst_14 = arith.constant dense<0.000000e+00> : vector<8x512xf32>
    %19 = tpu.matmul %17, %18, %cst_14 {dimension_numbers = #tpu.dot_dimension_numbers<[1], [0], [0], [1], [0, 0, 1, 1], [], []>} : vector<8x512xbf16>, vector<512x512xbf16>, vector<8x512xf32> -> vector<8x512xf32>
    %20 = arith.truncf %19 : vector<8x512xf32> to vector<8x512xbf16>
    %c0_15 = arith.constant 0 : index
    %c0_16 = arith.constant 0 : index
    %21 = vector.load %arg7[%c0_15, %c0_16] : memref<1x512xbf16, #tpu.memory_space<vmem>>, vector<1x512xbf16>
    %22 = vector.broadcast %21 : vector<1x512xbf16> to vector<8x512xbf16>
    %23 = arith.addf %20, %22 : vector<8x512xbf16>
    %cst_17 = arith.constant 0.000000e+00 : bf16
    %24 = vector.broadcast %cst_17 : bf16 to vector<8x512xbf16>
    %25 = arith.maximumf %23, %24 : vector<8x512xbf16>
    %c0_18 = arith.constant 0 : index
    %c0_19 = arith.constant 0 : index
    %26 = vector.load %arg8[%c0_18, %c0_19] : memref<512x128xbf16, #tpu.memory_space<vmem>>, vector<512x128xbf16>
    %cst_20 = arith.constant dense<0.000000e+00> : vector<8x128xf32>
    %27 = tpu.matmul %25, %26, %cst_20 {dimension_numbers = #tpu.dot_dimension_numbers<[1], [0], [0], [1], [0, 0, 1, 1], [], []>} : vector<8x512xbf16>, vector<512x128xbf16>, vector<8x128xf32> -> vector<8x128xf32>
    %c0_21 = arith.constant 0 : index
    %c0_22 = arith.constant 0 : index
    %28 = vector.load %arg9[%c0_21, %c0_22] : memref<1x128xf32, #tpu.memory_space<vmem>>, vector<1x128xf32>
    %29 = vector.broadcast %28 : vector<1x128xf32> to vector<8x128xf32>
    %30 = arith.addf %27, %29 : vector<8x128xf32>
    %31 = arith.negf %30 : vector<8x128xf32>
    %32 = math.exp %31 : vector<8x128xf32>
    %cst_23 = arith.constant 1.000000e+00 : f32
    %33 = vector.broadcast %cst_23 : f32 to vector<8x128xf32>
    %34 = arith.addf %33, %32 : vector<8x128xf32>
    %35 = arith.divf %33, %34 : vector<8x128xf32>
    %c0_24 = arith.constant 0 : index
    %c0_25 = arith.constant 0 : index
    %36 = vector.load %arg10[%c0_24, %c0_25] : memref<8x128xf32, #tpu.memory_space<vmem>>, vector<8x128xf32>
    tpu.vector_store %arg10[%c0_24, %c0_25], %35 {strides = array<i32>} : memref<8x128xf32, #tpu.memory_space<vmem>>, vector<8x128xf32>,
    return
  }
  func.func @transform_0(%arg0: i32) -> (i32, i32) {
    %c0_i32 = arith.constant 0 : i32
    %c0_i32_0 = arith.constant 0 : i32
    return %arg0, %c0_i32 : i32, i32
  }
  func.func @transform_1(%arg0: i32) -> (i32, i32) {
    %c0_i32 = arith.constant 0 : i32
    %c0_i32_0 = arith.constant 0 : i32
    %c0_i32_1 = arith.constant 0 : i32
    return %c0_i32, %c0_i32_0 : i32, i32
  }
  func.func @transform_2(%arg0: i32) -> (i32, i32) {
    %c0_i32 = arith.constant 0 : i32
    %c0_i32_0 = arith.constant 0 : i32
    %c0_i32_1 = arith.constant 0 : i32
    return %c0_i32, %c0_i32_0 : i32, i32
  }
  func.func @transform_3(%arg0: i32) -> (i32, i32) {
    %c0_i32 = arith.constant 0 : i32
    %c0_i32_0 = arith.constant 0 : i32
    %c0_i32_1 = arith.constant 0 : i32
    return %c0_i32, %c0_i32_0 : i32, i32
  }
  func.func @transform_4(%arg0: i32) -> (i32, i32) {
    %c0_i32 = arith.constant 0 : i32
    %c0_i32_0 = arith.constant 0 : i32
    %c0_i32_1 = arith.constant 0 : i32
    return %c0_i32, %c0_i32_0 : i32, i32
  }
  func.func @transform_5(%arg0: i32) -> (i32, i32) {
    %c0_i32 = arith.constant 0 : i32
    %c0_i32_0 = arith.constant 0 : i32
    %c0_i32_1 = arith.constant 0 : i32
    return %c0_i32, %c0_i32_0 : i32, i32
  }
  func.func @transform_6(%arg0: i32) -> (i32, i32) {
    %c0_i32 = arith.constant 0 : i32
    %c0_i32_0 = arith.constant 0 : i32
    %c0_i32_1 = arith.constant 0 : i32
    return %c0_i32, %c0_i32_0 : i32, i32
  }
  func.func @transform_7(%arg0: i32) -> (i32, i32) {
    %c0_i32 = arith.constant 0 : i32
    %c0_i32_0 = arith.constant 0 : i32
    %c0_i32_1 = arith.constant 0 : i32
    return %c0_i32, %c0_i32_0 : i32, i32
  }
  func.func @transform_8(%arg0: i32) -> (i32, i32) {
    %c0_i32 = arith.constant 0 : i32
    %c0_i32_0 = arith.constant 0 : i32
    %c0_i32_1 = arith.constant 0 : i32
    return %c0_i32, %c0_i32_0 : i32, i32
  }
  func.func @transform_9(%arg0: i32) -> (i32, i32) {
    %c0_i32 = arith.constant 0 : i32
    %c0_i32_0 = arith.constant 0 : i32
    return %arg0, %c0_i32 : i32, i32
  }
}

</mosaic_0001>

<bundles_post_ra>
// kernel: classifier_forward.1
= control target key start
LH: loop header
LB: loop body
LE: loop exit
PB: predicated region body
PF: predicated region fallthrough
CT: control target
= control target key end

     0   :  { %14 = vsyncpa [#allocation3], 0  ;;  %s5411_s0 = inlined_call_operand.vmem [shape: bf16[8,64], index: 0, kind: input, shape index: {}]   ;;  %s5412_s1 = inlined_call_operand.hbm [shape: bf16[64,1024], index: 1, kind: input, shape index: {}]   ;;  %s5413_s2 = inlined_call_operand.vmem [shape: bf16[1,1024], index: 2, kind: input, shape index: {}]   ;;  %s5414_s3 = inlined_call_operand.hbm [shape: bf16[1024,512], index: 3, kind: input, shape index: {}]   ;;  %s5415_s4 = inlined_call_operand.vmem [shape: bf16[1,512], index: 4, kind: input, shape index: {}]   ;;  %s5416_s5 = inlined_call_operand.hbm [shape: bf16[512,512], index: 5, kind: input, shape index: {}]   ;;  %s5417_s6 = inlined_call_operand.vmem [shape: bf16[1,512], index: 6, kind: input, shape index: {}]   ;;  %s5418_s7 = inlined_call_operand.hbm [shape: bf16[512,128], index: 7, kind: input, shape index: {}]   ;;  %s5419_s8 = inlined_call_operand.vmem [shape: f32[1,128], index: 8, kind: input, shape index: {}]   ;;  %s5420_s9 = inlined_call_operand.hbm [shape: f32[8,128], index: 9, kind: output, shape index: {}]  }
   0x1   :  { %15 = vsyncpa [#allocation6], 0 }
   0x2   :  { %16 = vsyncpa [#allocation9], 0 }
   0x3   :  { %17 = vsyncpa [#allocation4], 0  ;;  %s5161_s30 = smov [#allocation5]   ;;  %s5043_s13 = scalar_lea.hbm %s5414_s3, 32768 }
   0x4   :  { %s39_s10 = sshll.u32 %s5161_s30, 4  ;;  %p5044_p0 = scmp.ne.s32.totalorder %s5414_s3, %s5043_s13  ;;  %s40_s10 = int_to_ptr.vmem [resolvable:$true] %s39_s10 }
   0x5   :  { %p5047_p1 = scmp.lt.u32.totalorder %s5043_s13, %s5414_s3 }
   0x7   :  { %p5049_p2 = pnand %p5047_p1, %p5044_p0 }
   0x9   :  { %5052 = shalt.err (!%p5049_p2)
}
   0xa   :  { %s5053_s18 = scalar_lea.vmem %s40_s10, 32768  ;;  %p5058_p4 = scmp.lt.s32.totalorder %s40_s10, %s40_s10 }
   0xb   :  { %p5054_p3 = scmp.ne.s32.totalorder %s40_s10, %s5053_s18  ;;  %p5059_p5 = scmp.lt.s32.totalorder %s5053_s18, %s5053_s18 }
   0xd   :  { %p5060_p6 = por %p5059_p5, %p5058_p4 }
   0xf   :  { %p5061_p7 = pnand %p5060_p6, %p5054_p3 }
  0x11   :  { %5064 = shalt.err (!%p5061_p7)
}
  0x12   :  { %s5162_s19 = smov 256   ;;  %s5163_s20 = smov 16  }
  0x13   :  { %45 = dma.hbm_to_vmem [thread:$0]  %s5414_s3, 32768, %s40_s10, [#allocation6], %s5162_s19, %s5162_s19, %s5163_s20  }
  0x14   :  { %s5164_s23 = smov [#allocation2]   ;;  %s5065_s27 = scalar_lea.hbm %s5412_s1, 4096 }
  0x15   :  { %s25_s24 = sshll.u32 %s5164_s23, 4  ;;  %p5066_p8 = scmp.ne.s32.totalorder %s5412_s1, %s5065_s27  ;;  %s26_s24 = int_to_ptr.vmem [resolvable:$true] %s25_s24 }
  0x16   :  { %p5069_p9 = scmp.lt.u32.totalorder %s5065_s27, %s5412_s1 }
  0x18   :  { %p5071_p10 = pnand %p5069_p9, %p5066_p8 }
  0x1a   :  { %5074 = shalt.err (!%p5071_p10)
}
  0x1b   :  { %s5075_s12 = scalar_lea.vmem %s26_s24, 4096  ;;  %p5080_p12 = scmp.lt.s32.totalorder %s26_s24, %s26_s24 }
  0x1c   :  { %p5076_p11 = scmp.ne.s32.totalorder %s26_s24, %s5075_s12  ;;  %p5081_p13 = scmp.lt.s32.totalorder %s5075_s12, %s5075_s12 }
  0x1e   :  { %p5082_p0 = por %p5081_p13, %p5080_p12 }
  0x20   :  { %p5083_p1 = pnand %p5082_p0, %p5076_p11 }
  0x22   :  { %5086 = shalt.err (!%p5083_p1)
}
  0x23   :  { %s5165_s3 = smov 512   ;;  %s5166_s10 = smov 32  }
  0x24   :  { %31 = dma.hbm_to_vmem [thread:$0]  %s5412_s1, 4096, %s26_s24, [#allocation3], %s5165_s3, %s5165_s3, %s5166_s10  }
  0x25   :  { %s5167_s15 = smov [#allocation7]   ;;  %s5168_s17 = smov [#allocation8]  }
  0x26   :  { %s53_s16 = sshll.u32 %s5167_s15, 4  ;;  %s67_s18 = sshll.u32 %s5168_s17, 4  ;;  %s54_s16 = int_to_ptr.vmem [resolvable:$true] %s53_s16  ;;  %s5251_s18 = int_to_ptr.vmem [resolvable:$true] %s67_s18 }
  0x27   :  { %s5087_s23 = scalar_lea.hbm %s5416_s5, 16384 }
  0x28   :  { %p5088_p2 = scmp.ne.s32.totalorder %s5416_s5, %s5087_s23  ;;  %p5091_p3 = scmp.lt.u32.totalorder %s5087_s23, %s5416_s5 }
  0x2a   :  { %p5093_p4 = pnand %p5091_p3, %p5088_p2 }
  0x2c   :  { %5096 = shalt.err (!%p5093_p4)
}
  0x2d   :  { %s5097_s1 = scalar_lea.vmem %s54_s16, 16384  ;;  %p5102_p6 = scmp.lt.s32.totalorder %s54_s16, %s54_s16 }
  0x2e   :  { %p5098_p5 = scmp.ne.s32.totalorder %s54_s16, %s5097_s1  ;;  %p5103_p7 = scmp.lt.s32.totalorder %s5097_s1, %s5097_s1 }
  0x30   :  { %p5104_p8 = por %p5103_p7, %p5102_p6 }
  0x32   :  { %p5105_p9 = pnand %p5104_p8, %p5098_p5 }
  0x34   :  { %5108 = shalt.err (!%p5105_p9)
}
  0x35   :  { %59 = dma.hbm_to_vmem [thread:$0]  %s5416_s5, 16384, %s54_s16, [#allocation6], %s5162_s19, %s5162_s19, %s5163_s20  }
  0x36   :  { %s5109_s12 = scalar_lea.hbm %s5418_s7, 4096 }
  0x37   :  { %p5110_p10 = scmp.ne.s32.totalorder %s5418_s7, %s5109_s12  ;;  %p5113_p11 = scmp.lt.u32.totalorder %s5109_s12, %s5418_s7 }
  0x39   :  { %p5115_p12 = pnand %p5113_p11, %p5110_p10 }
  0x3b   :  { %5118 = shalt.err (!%p5115_p12)
}
  0x3c   :  { %s5119_s15 = scalar_lea.vmem %s5251_s18, 4096  ;;  %p5124_p0 = scmp.lt.s32.totalorder %s5251_s18, %s5251_s18 }
  0x3d   :  { %p5120_p13 = scmp.ne.s32.totalorder %s5251_s18, %s5119_s15  ;;  %p5125_p1 = scmp.lt.s32.totalorder %s5119_s15, %s5119_s15 }
  0x3f   :  { %p5126_p2 = por %p5125_p1, %p5124_p0 }
  0x41   :  { %p5127_p3 = pnand %p5126_p2, %p5120_p13 }
  0x43   :  { %5130 = shalt.err (!%p5127_p3)
}
  0x44   :  { %s5169_s5 = smov 64   ;;  %s5170_s19 = smov 4  }
  0x45   :  { %73 = dma.hbm_to_vmem [thread:$0]  %s5418_s7, 4096, %s5251_s18, [#allocation9], %s5169_s5, %s5169_s5, %s5170_s19  }
  0x46   :  { %5153 = dma.done.wait [#allocation3], 4096  }
  0x47   :  { %5154 = vsyncadd [#allocation3], 4294963200 }
  0x48   :  { %5155 = dma.done.wait [#allocation6], 49152  }
  0x49   :  { %5156 = vsyncadd [#allocation6], 4294918144 }
  0x4a   :  { %5157 = dma.done.wait [#allocation9], 4096  }
  0x4b   :  { %5158 = vsyncadd [#allocation9], 4294963200  ;;  %v5171_v0 = vmov 0   ;;  %v91_v1 = vld [vmem:[#allocation2] sm:$0xff]  ;;  %v92_v10 = vld [vmem:[#allocation2 + $0x8] sm:$0xff]  ;;  %vm283_vm0 = vcmask 523264  }
  0x4c   :  { %319 = vmatprep.mubr.bf16.mxu0 %v5171_v0  ;;  %360 = vmatprep.mubr.bf16.mxu1 %v5171_v0  ;;  %v95_v2 = vld [vmem:[#allocation2 + $0x20] sm:$0xff]  ;;  %v96_v11 = vld [vmem:[#allocation2 + $0x28] sm:$0xff]  ;;  %v93_v29 = vld [vmem:[#allocation2 + $0x10] sm:$0xff]  ;;  %s5173_s25 = smov [#allocation10]  }
  0x4d   :  { %v99_v3 = vld [vmem:[#allocation2 + $0x40] sm:$0xff]  ;;  %v3886_v4 = vcombine.high %v91_v1, %v95_v2  ;;  %v3885_v5 = vcombine.low %v91_v1, %v95_v2  ;;  %v100_v12 = vld [vmem:[#allocation2 + $0x48] sm:$0xff]  ;;  %v3888_v14 = vcombine.high %v92_v10, %v96_v11  ;;  %v3887_v15 = vcombine.low %v92_v10, %v96_v11  ;;  %v97_v30 = vld [vmem:[#allocation2 + $0x30] sm:$0xff]  ;;  %s3874_s26 = sshll.u32 %s5173_s25, 4  ;;  %s3875_s26 = int_to_ptr.vmem [resolvable:$true] %s3874_s26 }
  0x4e   :  { %v103_v6 = vld [vmem:[#allocation2 + $0x60] sm:$0xff]  ;;  %v104_v16 = vld [vmem:[#allocation2 + $0x68] sm:$0xff]  ;;  %v3890_v34 = vcombine.high %v93_v29, %v97_v30  ;;  %v101_v35 = vld [vmem:[#allocation2 + $0x50] sm:$0xff]  ;;  %v3889_v41 = vcombine.low %v93_v29, %v97_v30  ;;  %p5136_p5 = scmp.lt.s32.totalorder %s3875_s26, %s3875_s26 }
  0x4f   :  { %v3894_v7 = vcombine.high %v99_v3, %v103_v6  ;;  %v107_v8 = vld [vmem:[#allocation2 + $0x80] sm:$0xff]  ;;  %287 = vmatprep.subr.bf16.mxu0 %v3886_v4  ;;  %v3893_v13 = vcombine.low %v99_v3, %v103_v6  ;;  %v3896_v18 = vcombine.high %v100_v12, %v104_v16  ;;  %v108_v19 = vld [vmem:[#allocation2 + $0x88] sm:$0xff]  ;;  %328 = vmatprep.subr.bf16.mxu1 %v3888_v14  ;;  %v105_v36 = vld [vmem:[#allocation2 + $0x70] sm:$0xff] }
  0x50   :  { %v111_v9 = vld [vmem:[#allocation2 + $0xa0] sm:$0xff]  ;;  %288 = vmatpush1.bf16.msra.mxu0 %v3885_v5  ;;  %v112_v20 = vld [vmem:[#allocation2 + $0xa8] sm:$0xff]  ;;  %329 = vmatpush1.bf16.msra.mxu1 %v3887_v15  ;;  %v3895_v23 = vcombine.low %v100_v12, %v104_v16  ;;  %v94_v37 = vld [vmem:[#allocation2 + $0x18] sm:$0xff]  ;;  %v3898_v42 = vcombine.high %v101_v35, %v105_v36  ;;  %v3897_v49 = vcombine.low %v101_v35, %v105_v36 }
  0x51   :  { %289 = vmatprep.subr.bf16.mxu0 %v3894_v7  ;;  %v3902_v17 = vcombine.high %v107_v8, %v111_v9  ;;  %v115_v21 = vld [vmem:[#allocation2 + $0xc0] sm:$0xff]  ;;  %v3901_v24 = vcombine.low %v107_v8, %v111_v9  ;;  %330 = vmatprep.subr.bf16.mxu1 %v3896_v18  ;;  %v3904_v25 = vcombine.high %v108_v19, %v112_v20  ;;  %v116_v27 = vld [vmem:[#allocation2 + $0xc8] sm:$0xff]  ;;  %v98_v38 = vld [vmem:[#allocation2 + $0x38] sm:$0xff] }
  0x52   :  { %v119_v22 = vld [vmem:[#allocation2 + $0xe0] sm:$0xff]  ;;  %v120_v28 = vld [vmem:[#allocation2 + $0xe8] sm:$0xff]  ;;  %v3903_v31 = vcombine.low %v108_v19, %v112_v20  ;;  %v90_v40 = vld [vmem:[%s5411_s0] sm:$0xf]  ;;  %v3892_v43 = vcombine.high %v94_v37, %v98_v38  ;;  %v3891_v48 = vcombine.low %v94_v37, %v98_v38 }
  0x53   :  { %v3910_v26 = vcombine.high %v115_v21, %v119_v22  ;;  %v3909_v32 = vcombine.low %v115_v21, %v119_v22  ;;  %v3912_v33 = vcombine.high %v116_v27, %v120_v28  ;;  %v3911_v39 = vcombine.low %v116_v27, %v120_v28  ;;  %v102_v44 = vld [vmem:[#allocation2 + $0x58] sm:$0xff]  ;;  %v109_v46 = vld [vmem:[#allocation2 + $0x90] sm:$0xff] }
  0x54   :  { %290 = vmatpush1.bf16.msra.mxu0 %v3893_v13  ;;  %331 = vmatpush1.bf16.msra.mxu1 %v3895_v23  ;;  %v106_v45 = vld [vmem:[#allocation2 + $0x78] sm:$0xff]  ;;  %v113_v47 = vld [vmem:[#allocation2 + $0xb0] sm:$0xff] }
  0x55   :  { %291 = vmatprep.subr.bf16.mxu0 %v3902_v17  ;;  %332 = vmatprep.subr.bf16.mxu1 %v3904_v25  ;;  %v3900_v50 = vcombine.high %v102_v44, %v106_v45  ;;  %v3906_v51 = vcombine.high %v109_v46, %v113_v47  ;;  %v110_v52 = vld [vmem:[#allocation2 + $0x98] sm:$0xff]  ;;  %v117_v54 = vld [vmem:[#allocation2 + $0xd0] sm:$0xff]  ;;  %v3899_v56 = vcombine.low %v102_v44, %v106_v45 }
  0x56   :  { %v114_v53 = vld [vmem:[#allocation2 + $0xb8] sm:$0xff]  ;;  %v121_v55 = vld [vmem:[#allocation2 + $0xf0] sm:$0xff]  ;;  %v3905_v57 = vcombine.low %v109_v46, %v113_v47 }
  0x57   :  { %v3908_v58 = vcombine.high %v110_v52, %v114_v53  ;;  %v3914_v59 = vcombine.high %v117_v54, %v121_v55  ;;  %v118_v60 = vld [vmem:[#allocation2 + $0xd8] sm:$0xff]  ;;  %v3907_v62 = vcombine.low %v110_v52, %v114_v53  ;;  %v3913_v63 = vcombine.low %v117_v54, %v121_v55  ;;  %v4432_v2 = vld [vmem:[#allocation5 + $0x4] ss:$16 sps:$4 sm:$0xff]   ;;  %v4430_v4 = vld [vmem:[#allocation5] ss:$16 sps:$4 sm:$0xff]  }
  0x58   :  { %292 = vmatpush1.bf16.msra.mxu0 %v3901_v24  ;;  %333 = vmatpush1.bf16.msra.mxu1 %v3903_v31  ;;  %v122_v61 = vld [vmem:[#allocation2 + $0xf8] sm:$0xff]  ;;  %v4438_v6 = vld [vmem:[#allocation5 + $0x24] ss:$16 sps:$4 sm:$0xff]   ;;  %v4436_v8 = vld [vmem:[#allocation5 + $0x20] ss:$16 sps:$4 sm:$0xff]  }
  0x59   :  { %293 = vmatprep.subr.bf16.mxu0 %v3910_v26  ;;  %334 = vmatprep.subr.bf16.mxu1 %v3912_v33  ;;  %v3916_v1 = vcombine.high %v118_v60, %v122_v61  ;;  %v3915_v3 = vcombine.low %v118_v60, %v122_v61  ;;  %v4435_v5 = vld [vmem:[#allocation5 + $0xc] ss:$16 sps:$4 sm:$0xff]   ;;  %v4433_v7 = vld [vmem:[#allocation5 + $0x8] ss:$16 sps:$4 sm:$0xff]   ;;  %v4444_v10 = vld [vmem:[#allocation5 + $0x44] ss:$16 sps:$4 sm:$0xff]  }
  0x5a   :  { %v4441_v9 = vld [vmem:[#allocation5 + $0x2c] ss:$16 sps:$4 sm:$0xff]   ;;  %v4439_v11 = vld [vmem:[#allocation5 + $0x28] ss:$16 sps:$4 sm:$0xff]   ;;  %v4442_v12 = vld [vmem:[#allocation5 + $0x40] ss:$16 sps:$4 sm:$0xff]  }
  0x5b   :  { %v4447_v13 = vld [vmem:[#allocation5 + $0x4c] ss:$16 sps:$4 sm:$0xff]   ;;  %v4450_v14 = vld [vmem:[#allocation5 + $0x64] ss:$16 sps:$4 sm:$0xff]   ;;  %v4445_v15 = vld [vmem:[#allocation5 + $0x48] ss:$16 sps:$4 sm:$0xff]  }
  0x5c   :  { %294 = vmatpush1.bf16.msra.mxu0 %v3909_v32  ;;  %335 = vmatpush1.bf16.msra.mxu1 %v3911_v39  ;;  %v4448_v16 = vld [vmem:[#allocation5 + $0x60] ss:$16 sps:$4 sm:$0xff]   ;;  %v4453_v17 = vld [vmem:[#allocation5 + $0x6c] ss:$16 sps:$4 sm:$0xff]   ;;  %v4456_v18 = vld [vmem:[#allocation5 + $0x84] ss:$16 sps:$4 sm:$0xff]  }
  0x5d   :  { %369 = vmatprep.subr.bf16.mxu0 %v3890_v34  ;;  %410 = vmatprep.subr.bf16.mxu1 %v3892_v43  ;;  %v4451_v19 = vld [vmem:[#allocation5 + $0x68] ss:$16 sps:$4 sm:$0xff]   ;;  %v4454_v20 = vld [vmem:[#allocation5 + $0x80] ss:$16 sps:$4 sm:$0xff]   ;;  %v4459_v21 = vld [vmem:[#allocation5 + $0x8c] ss:$16 sps:$4 sm:$0xff]  }
  0x5e   :  { %v4462_v22 = vld [vmem:[#allocation5 + $0xa4] ss:$16 sps:$4 sm:$0xff]   ;;  %v4457_v23 = vld [vmem:[#allocation5 + $0x88] ss:$16 sps:$4 sm:$0xff]   ;;  %v4460_v24 = vld [vmem:[#allocation5 + $0xa0] ss:$16 sps:$4 sm:$0xff]  }
  0x5f   :  { %3917 = vmatmul.mubr.msk.bf16.vlgmr.msra.gmra.mrb[0].mxu0 %vm283_vm0, %v90_v40  ;;  %3918 = vmatmul.mubr.msk.bf16.vlgmr.msra.gmra.mrb[0].mxu1 %vm283_vm0, %v90_v40  ;;  %v4465_v25 = vld [vmem:[#allocation5 + $0xac] ss:$16 sps:$4 sm:$0xff]   ;;  %v4468_v26 = vld [vmem:[#allocation5 + $0xc4] ss:$16 sps:$4 sm:$0xff]   ;;  %v4463_v27 = vld [vmem:[#allocation5 + $0xa8] ss:$16 sps:$4 sm:$0xff]  }
  0x60   :  { %370 = vmatpush1.bf16.msra.mxu0 %v3889_v41  ;;  %401 = vmatprep.mubr.bf16.mxu0 %v5171_v0  ;;  %v4466_v28 = vld [vmem:[#allocation5 + $0xc0] ss:$16 sps:$4 sm:$0xff]   ;;  %v4471_v29 = vld [vmem:[#allocation5 + $0xcc] ss:$16 sps:$4 sm:$0xff]   ;;  %v4474_v30 = vld [vmem:[#allocation5 + $0xe4] ss:$16 sps:$4 sm:$0xff]  }
  0x61   :  { %371 = vmatprep.subr.bf16.mxu0 %v3898_v42  ;;  %411 = vmatpush1.bf16.msra.mxu1 %v3891_v48  ;;  %v4469_v31 = vld [vmem:[#allocation5 + $0xc8] ss:$16 sps:$4 sm:$0xff]   ;;  %v4472_v32 = vld [vmem:[#allocation5 + $0xe0] ss:$16 sps:$4 sm:$0xff]   ;;  %v4477_v33 = vld [vmem:[#allocation5 + $0xec] ss:$16 sps:$4 sm:$0xff]  }
  0x62   :  { %442 = vmatprep.mubr.bf16.mxu1 %v5171_v0  ;;  %412 = vmatprep.subr.bf16.mxu1 %v3900_v50  ;;  %v4480_v34 = vld [vmem:[#allocation5 + $0x104] ss:$16 sps:$4 sm:$0xff]   ;;  %v4475_v35 = vld [vmem:[#allocation5 + $0xe8] ss:$16 sps:$4 sm:$0xff]   ;;  %v4478_v36 = vld [vmem:[#allocation5 + $0x100] ss:$16 sps:$4 sm:$0xff]  }
  0x63   :  { %v4483_v37 = vld [vmem:[#allocation5 + $0x10c] ss:$16 sps:$4 sm:$0xff]   ;;  %v4486_v38 = vld [vmem:[#allocation5 + $0x124] ss:$16 sps:$4 sm:$0xff]   ;;  %v4481_v39 = vld [vmem:[#allocation5 + $0x108] ss:$16 sps:$4 sm:$0xff]  }
  0x64   :  { %372 = vmatpush1.bf16.msra.mxu0 %v3897_v49  ;;  %v4489_v41 = vld [vmem:[#allocation5 + $0x12c] ss:$16 sps:$4 sm:$0xff]   ;;  %v4492_v42 = vld [vmem:[#allocation5 + $0x144] ss:$16 sps:$4 sm:$0xff]   ;;  %v4487_v43 = vld [vmem:[#allocation5 + $0x128] ss:$16 sps:$4 sm:$0xff]  }
  0x65   :  { %373 = vmatprep.subr.bf16.mxu0 %v3906_v51  ;;  %413 = vmatpush1.bf16.msra.mxu1 %v3899_v56  ;;  %v4490_v44 = vld [vmem:[#allocation5 + $0x140] ss:$16 sps:$4 sm:$0xff]   ;;  %v4495_v45 = vld [vmem:[#allocation5 + $0x14c] ss:$16 sps:$4 sm:$0xff]   ;;  %v4498_v46 = vld [vmem:[#allocation5 + $0x164] ss:$16 sps:$4 sm:$0xff]  }
  0x66   :  { %414 = vmatprep.subr.bf16.mxu1 %v3908_v58  ;;  %v4493_v47 = vld [vmem:[#allocation5 + $0x148] ss:$16 sps:$4 sm:$0xff]   ;;  %v4496_v48 = vld [vmem:[#allocation5 + $0x160] ss:$16 sps:$4 sm:$0xff]   ;;  %v4501_v49 = vld [vmem:[#allocation5 + $0x16c] ss:$16 sps:$4 sm:$0xff]  }
  0x67   :  { %v4504_v50 = vld [vmem:[#allocation5 + $0x184] ss:$16 sps:$4 sm:$0xff]   ;;  %v4499_v51 = vld [vmem:[#allocation5 + $0x168] ss:$16 sps:$4 sm:$0xff]   ;;  %v4502_v52 = vld [vmem:[#allocation5 + $0x180] ss:$16 sps:$4 sm:$0xff]  }
  0x68   :  { %374 = vmatpush1.bf16.msra.mxu0 %v3905_v57  ;;  %v4507_v53 = vld [vmem:[#allocation5 + $0x18c] ss:$16 sps:$4 sm:$0xff]   ;;  %v4510_v54 = vld [vmem:[#allocation5 + $0x1a4] ss:$16 sps:$4 sm:$0xff]   ;;  %v4505_v55 = vld [vmem:[#allocation5 + $0x188] ss:$16 sps:$4 sm:$0xff]  }
  0x69   :  { %375 = vmatprep.subr.bf16.mxu0 %v3914_v59  ;;  %415 = vmatpush1.bf16.msra.mxu1 %v3907_v62  ;;  %v4508_v56 = vld [vmem:[#allocation5 + $0x1a0] ss:$16 sps:$4 sm:$0xff]   ;;  %v4513_v57 = vld [vmem:[#allocation5 + $0x1ac] ss:$16 sps:$4 sm:$0xff]   ;;  %v4511_v58 = vld [vmem:[#allocation5 + $0x1a8] ss:$16 sps:$4 sm:$0xff]  }
  0x6a   :  { %416 = vmatprep.subr.bf16.mxu1 %v3916_v1  ;;  %v4516_v59 = vld [vmem:[#allocation5 + $0x1c4] ss:$16 sps:$4 sm:$0xff]   ;;  %v4519_v60 = vld [vmem:[#allocation5 + $0x1cc] ss:$16 sps:$4 sm:$0xff]   ;;  %v4514_v61 = vld [vmem:[#allocation5 + $0x1c0] ss:$16 sps:$4 sm:$0xff]  }
  0x6b   :  { %v4517_v62 = vld [vmem:[#allocation5 + $0x1c8] ss:$16 sps:$4 sm:$0xff]   ;;  %v4525_v1 = vld [vmem:[#allocation5 + $0x1ec] ss:$16 sps:$4 sm:$0xff]  }
  0x6c   :  { %376 = vmatpush1.bf16.msra.mxu0 %v3913_v63  ;;  %v4522_v63 = vld [vmem:[#allocation5 + $0x1e4] ss:$16 sps:$4 sm:$0xff]  }
  0x6d   :  { %2126 = vmatprep.subr.bf16.mxu0 %v4432_v2  ;;  %417 = vmatpush1.bf16.msra.mxu1 %v3915_v3  ;;  %v4520_v2 = vld [vmem:[#allocation5 + $0x1e0] ss:$16 sps:$4 sm:$0xff]   ;;  %v4523_v3 = vld [vmem:[#allocation5 + $0x1e8] ss:$16 sps:$4 sm:$0xff]  }
  0x6e   :  { %2290 = vmatprep.subr.bf16.mxu1 %v4435_v5  ;;  %v4531_v5 = vld [vmem:[#allocation5 + $0x20c] ss:$16 sps:$4 sm:$0xff]  }
  0x6f   :  { %3919 = vmatmul.mubr.msk.bf16.vlgmr.msra.gmra.mrb[4].mxu0 %vm283_vm0, %v90_v40 }
  0x70   :  { %2127 = vmatpush1.bf16.msra.mxu0 %v4430_v4  ;;  %3920 = vmatmul.mubr.msk.bf16.vlgmr.msra.gmra.mrb[4].mxu1 %vm283_vm0, %v90_v40  ;;  %v4484_v40 = vld [vmem:[#allocation5 + $0x120] ss:$16 sps:$4 sm:$0xff]   ;;  %v4528_v4 = vld [vmem:[#allocation5 + $0x204] ss:$16 sps:$4 sm:$0xff]  }
  0x71   :  { %2128 = vmatprep.subr.bf16.mxu0 %v4438_v6  ;;  %2291 = vmatpush1.bf16.msra.mxu1 %v4433_v7  ;;  %v5172_v6 = vmov 1966171168  }
  0x72   :  { %2292 = vmatprep.subr.bf16.mxu1 %v4441_v9  ;;  %v463_v7 = vunpack.c.l.s4 %v5172_v6  ;;  %v4547_v6 = vld [vmem:[#allocation5 + $0x268] ss:$16 sps:$4 sm:$0xff]  }
  0x74   :  { %2129 = vmatpush1.bf16.msra.mxu0 %v4436_v8  ;;  %v465_v8 = vlaneseq  ;;  %v464_v9 = vunpack.c.0.s8 %v463_v7  ;;  %v4552_v7 = vld [vmem:[#allocation5 + $0x284] ss:$16 sps:$4 sm:$0xff]  }
  0x75   :  { %2130 = vmatprep.subr.bf16.mxu0 %v4444_v10  ;;  %2293 = vmatpush1.bf16.msra.mxu1 %v4439_v11 }
  0x76   :  { %2294 = vmatprep.subr.bf16.mxu1 %v4447_v13  ;;  %v466_v10 = vshrl.u32 %v465_v8, 7  ;;  %v4555_v8 = vld [vmem:[#allocation5 + $0x28c] ss:$16 sps:$4 sm:$0xff]  }
  0x78   :  { %2131 = vmatpush1.bf16.msra.mxu0 %v4442_v12  ;;  %v5296_v11 = vsub.s32 %v464_v9, %v466_v10  ;;  %v459_v12 = vld [vmem:[%s5413_s2] sm:$0xff]  ;;  %v4550_v9 = vld [vmem:[#allocation5 + $0x280] ss:$16 sps:$4 sm:$0xff]  }
  0x79   :  { %2132 = vmatprep.subr.bf16.mxu0 %v4450_v14  ;;  %2295 = vmatpush1.bf16.msra.mxu1 %v4445_v15 }
  0x7a   :  { %2296 = vmatprep.subr.bf16.mxu1 %v4453_v17  ;;  %v468_v13 = vrot.slane %v459_v12, %v5296_v11 }
  0x7c   :  { %2133 = vmatpush1.bf16.msra.mxu0 %v4448_v16  ;;  %v476_v14 = vcombine.high %v468_v13, %v468_v13  ;;  %v5303_v15 = vrot.slane %v468_v13, %v5296_v11  ;;  %v4561_v13 = vld [vmem:[#allocation5 + $0x2ac] ss:$16 sps:$4 sm:$0xff]  }
  0x7d   :  { %2134 = vmatprep.subr.bf16.mxu0 %v4456_v18  ;;  %2297 = vmatpush1.bf16.msra.mxu1 %v4451_v19  ;;  %v5308_v18 = vsub.s32 0, %v466_v10  ;;  %v4553_v10 = vld [vmem:[#allocation5 + $0x288] ss:$16 sps:$4 sm:$0xff]  }
  0x7e   :  { %2298 = vmatprep.subr.bf16.mxu1 %v4459_v21  ;;  %v498_v16 = vrot.slane %v476_v14, %v5296_v11  ;;  %v511_v17 = vpack.i.b16 %v5303_v15, %v5303_v15  ;;  %v4556_v14 = vld [vmem:[#allocation5 + $0x2a0] ss:$16 sps:$4 sm:$0xff]  }
  0x80   :  { %2135 = vmatpush1.bf16.msra.mxu0 %v4454_v20  ;;  %v508_v19 = vcombine.high %v498_v16, %v498_v16  ;;  %v518_v20 = vpack.i.b16 %v498_v16, %v498_v16  ;;  %v516_v21 = vrot.slane %v511_v17, %v5308_v18  ;;  %v4559_v16 = vld [vmem:[#allocation5 + $0x2a8] ss:$16 sps:$4 sm:$0xff]   ;;  %v4564_v17 = vld [vmem:[#allocation5 + $0x2c4] ss:$16 sps:$4 sm:$0xff]  }
  0x81   :  { %2136 = vmatprep.subr.bf16.mxu0 %v4462_v22  ;;  %2299 = vmatpush1.bf16.msra.mxu1 %v4457_v23 }
  0x82   :  { %2300 = vmatprep.subr.bf16.mxu1 %v4465_v25  ;;  %v532_v22 = vpack.i.b16 %v508_v19, %v508_v19  ;;  %v4567_v19 = vld [vmem:[#allocation5 + $0x2cc] ss:$16 sps:$4 sm:$0xff]  }
  0x84   :  { %2137 = vmatpush1.bf16.msra.mxu0 %v4460_v24  ;;  %v523_v24 = vrot.slane %v518_v20, %v5308_v18  ;;  %v4562_v20 = vld [vmem:[#allocation5 + $0x2c0] ss:$16 sps:$4 sm:$0xff]  }
  0x85   :  { %2138 = vmatprep.subr.bf16.mxu0 %v4468_v26  ;;  %2301 = vmatpush1.bf16.msra.mxu1 %v4463_v27  ;;  %v461_v27 = vcombine.high %v459_v12, %v459_v12  ;;  %v4558_v12 = vld [vmem:[#allocation5 + $0x2a4] ss:$16 sps:$4 sm:$0xff]  }
  0x86   :  { %2302 = vmatprep.subr.bf16.mxu1 %v4471_v29 }
  0x88   :  { %2139 = vmatpush1.bf16.msra.mxu0 %v4466_v28 }
  0x89   :  { %2140 = vmatprep.subr.bf16.mxu0 %v4474_v30  ;;  %2303 = vmatpush1.bf16.msra.mxu1 %v4469_v31 }
  0x8a   :  { %2304 = vmatprep.subr.bf16.mxu1 %v4477_v33  ;;  %v537_v33 = vrot.slane %v532_v22, %v5308_v18  ;;  %v4570_v22 = vld [vmem:[#allocation5 + $0x2e4] ss:$16 sps:$4 sm:$0xff]  }
  0x8c   :  { %2141 = vmatpush1.bf16.msra.mxu0 %v4472_v32 }
  0x8d   :  { %2142 = vmatprep.subr.bf16.mxu0 %v4480_v34  ;;  %2305 = vmatpush1.bf16.msra.mxu1 %v4475_v35 }
  0x8e   :  { %2306 = vmatprep.subr.bf16.mxu1 %v4483_v37 }
  0x90   :  { %2143 = vmatpush1.bf16.msra.mxu0 %v4478_v36 }
  0x91   :  { %2144 = vmatprep.subr.bf16.mxu0 %v4486_v38  ;;  %2307 = vmatpush1.bf16.msra.mxu1 %v4481_v39  ;;  %v5316_v39 = vrot.slane %v461_v27, %v5296_v11  ;;  %v4579_v27 = vld [vmem:[#allocation5 + $0x30c] ss:$16 sps:$4 sm:$0xff]  }
  0x92   :  { %2308 = vmatprep.subr.bf16.mxu1 %v4489_v41 }
  0x94   :  { %2145 = vmatpush1.bf16.msra.mxu0 %v4484_v40 }
  0x95   :  { %2146 = vmatprep.subr.bf16.mxu0 %v4492_v42  ;;  %2309 = vmatpush1.bf16.msra.mxu1 %v4487_v43  ;;  %v5320_v43 = vrot.slane %v5316_v39, %v5296_v11 }
  0x96   :  { %2310 = vmatprep.subr.bf16.mxu1 %v4495_v45  ;;  %v4526_v45 = vld [vmem:[#allocation5 + $0x200] ss:$16 sps:$4 sm:$0xff]  }
  0x98   :  { %2147 = vmatpush1.bf16.msra.mxu0 %v4490_v44 }
  0x99   :  { %2148 = vmatprep.subr.bf16.mxu0 %v4498_v46  ;;  %2311 = vmatpush1.bf16.msra.mxu1 %v4493_v47  ;;  %v4529_v46 = vld [vmem:[#allocation5 + $0x208] ss:$16 sps:$4 sm:$0xff]  }
  0x9a   :  { %2312 = vmatprep.subr.bf16.mxu1 %v4501_v49  ;;  %v4537_v49 = vld [vmem:[#allocation5 + $0x22c] ss:$16 sps:$4 sm:$0xff]  }
  0x9c   :  { %2149 = vmatpush1.bf16.msra.mxu0 %v4496_v48  ;;  %v4534_v48 = vld [vmem:[#allocation5 + $0x224] ss:$16 sps:$4 sm:$0xff]  }
  0x9d   :  { %2150 = vmatprep.subr.bf16.mxu0 %v4504_v50  ;;  %2313 = vmatpush1.bf16.msra.mxu1 %v4499_v51 }
  0x9e   :  { %2314 = vmatprep.subr.bf16.mxu1 %v4507_v53  ;;  %v4532_v53 = vld [vmem:[#allocation5 + $0x220] ss:$16 sps:$4 sm:$0xff]  }
  0xa0   :  { %2151 = vmatpush1.bf16.msra.mxu0 %v4502_v52  ;;  %v539_v52 = vpack.i.b16 %v5320_v43, %v5320_v43 }
  0xa1   :  { %2152 = vmatprep.subr.bf16.mxu0 %v4510_v54  ;;  %2315 = vmatpush1.bf16.msra.mxu1 %v4505_v55  ;;  %v4535_v54 = vld [vmem:[#allocation5 + $0x228] ss:$16 sps:$4 sm:$0xff]   ;;  %v4540_v55 = vld [vmem:[#allocation5 + $0x244] ss:$16 sps:$4 sm:$0xff]  }
  0xa2   :  { %2316 = vmatprep.subr.bf16.mxu1 %v4513_v57  ;;  %v544_v57 = vrot.slane %v539_v52, %v5308_v18 }
  0xa4   :  { %2153 = vmatpush1.bf16.msra.mxu0 %v4508_v56  ;;  %v4543_v56 = vld [vmem:[#allocation5 + $0x24c] ss:$16 sps:$4 sm:$0xff]  }
  0xa5   :  { %2317 = vmatpush1.bf16.msra.mxu1 %v4511_v58  ;;  %2154 = vmatprep.subr.bf16.mxu0 %v4516_v59  ;;  %v4538_v58 = vld [vmem:[#allocation5 + $0x240] ss:$16 sps:$4 sm:$0xff]   ;;  %v4541_v59 = vld [vmem:[#allocation5 + $0x248] ss:$16 sps:$4 sm:$0xff]  }
  0xa6   :  { %2318 = vmatprep.subr.bf16.mxu1 %v4519_v60 }
  0xa8   :  { %2155 = vmatpush1.bf16.msra.mxu0 %v4514_v61  ;;  %v4546_v61 = vld [vmem:[#allocation5 + $0x264] ss:$16 sps:$4 sm:$0xff]  }
  0xa9   :  { %2319 = vmatpush1.bf16.msra.mxu1 %v4517_v62  ;;  %2156 = vmatprep.subr.bf16.mxu0 %v4522_v63  ;;  %v4549_v62 = vld [vmem:[#allocation5 + $0x26c] ss:$16 sps:$4 sm:$0xff]  }
  0xaa   :  { %2320 = vmatprep.subr.bf16.mxu1 %v4525_v1 }
  0xac   :  { %2157 = vmatpush1.bf16.msra.mxu0 %v4520_v2 }
  0xad   :  { %2321 = vmatpush1.bf16.msra.mxu1 %v4523_v3  ;;  %2167 = vmatprep.subr.bf16.mxu0 %v4528_v4 }
  0xae   :  { %2331 = vmatprep.subr.bf16.mxu1 %v4531_v5  ;;  %v4544_v5 = vld [vmem:[#allocation5 + $0x260] ss:$16 sps:$4 sm:$0xff]  }
 0x132   :  { %v321_v23 = vpop.f32.mrb[0].mxu0  ;;  %v5312_v32 = vpop.f32.mrb[0].mxu1 }
 0x133   :  { %v451_v25 = vpack.c.bf16 %v321_v23, %v321_v23  ;;  %v323_v26 = vpop.f32.mrb[1].mxu0  ;;  %v364_v35 = vpop.f32.mrb[1].mxu1  ;;  %v4573_v23 = vld [vmem:[#allocation5 + $0x2ec] ss:$16 sps:$4 sm:$0xff]  }
 0x134   :  { %v452_v28 = vpack.c.bf16 %v323_v26, %v323_v26  ;;  %v325_v29 = vpop.f32.mrb[2].mxu0  ;;  %v454_v37 = vpack.c.bf16 %v364_v35, %v364_v35  ;;  %v366_v38 = vpop.f32.mrb[2].mxu1  ;;  %v4576_v26 = vld [vmem:[#allocation5 + $0x304] ss:$16 sps:$4 sm:$0xff]  }
 0x135   :  { %v566_v30 = vadd.bf16 %v516_v21, %v451_v25  ;;  %v326_v31 = vpop.f32.mrb[3].mxu0  ;;  %v367_v41 = vpop.f32.mrb[3].mxu1  ;;  %v4565_v21 = vld [vmem:[#allocation5 + $0x2c8] ss:$16 sps:$4 sm:$0xff]   ;;  %v4588_v35 = vld [vmem:[#allocation5 + $0x344] ss:$16 sps:$4 sm:$0xff]  }
 0x136   :  { %v567_v34 = vadd.bf16 %v523_v24, %v452_v28  ;;  %v569_v42 = vadd.bf16 %v537_v33, %v454_v37  ;;  %v4568_v24 = vld [vmem:[#allocation5 + $0x2e0] ss:$16 sps:$4 sm:$0xff]   ;;  %v4571_v25 = vld [vmem:[#allocation5 + $0x2e8] ss:$16 sps:$4 sm:$0xff]   ;;  %v4585_v31 = vld [vmem:[#allocation5 + $0x32c] ss:$16 sps:$4 sm:$0xff]  }
 0x137   :  { %v574_v36 = vmul.bf16 1009007652, %v566_v30  ;;  %v4574_v28 = vld [vmem:[#allocation5 + $0x300] ss:$16 sps:$4 sm:$0xff]   ;;  %v4577_v29 = vld [vmem:[#allocation5 + $0x308] ss:$16 sps:$4 sm:$0xff]  }
 0x138   :  { %v575_v40 = vmul.bf16 1009007652, %v567_v34  ;;  %v577_v50 = vmul.bf16 1009007652, %v569_v42  ;;  %v4580_v33 = vld [vmem:[#allocation5 + $0x320] ss:$16 sps:$4 sm:$0xff]  }
 0x139   :  { %v582_v47 = vmax.bf16 %v574_v36, %v566_v30  ;;  %v4582_v30 = vld [vmem:[#allocation5 + $0x324] ss:$16 sps:$4 sm:$0xff]   ;;  %v4591_v36 = vld [vmem:[#allocation5 + $0x34c] ss:$16 sps:$4 sm:$0xff]   ;;  %v4586_v37 = vld [vmem:[#allocation5 + $0x340] ss:$16 sps:$4 sm:$0xff]  }
 0x13a   :  { %v583_v44 = vmax.bf16 %v575_v40, %v567_v34  ;;  %v585_v51 = vmax.bf16 %v577_v50, %v569_v42  ;;  %v4583_v34 = vld [vmem:[#allocation5 + $0x328] ss:$16 sps:$4 sm:$0xff]   ;;  %v4594_v40 = vld [vmem:[#allocation5 + $0x364] ss:$16 sps:$4 sm:$0xff]   ;;  %v4597_v41 = vld [vmem:[#allocation5 + $0x36c] ss:$16 sps:$4 sm:$0xff]   ;;  %v477_v42 = vcombine.high %v5316_v39, %v5316_v39 }
 0x13b   :  { %v4589_v38 = vld [vmem:[#allocation5 + $0x348] ss:$16 sps:$4 sm:$0xff]   ;;  %v4598_v50 = vld [vmem:[#allocation5 + $0x380] ss:$16 sps:$4 sm:$0xff]   ;;  %v4606_v39 = vld [vmem:[#allocation5 + $0x3a4] ss:$16 sps:$4 sm:$0xff]  }
 0x13c   :  { %2158 = vmatprep.mubr.bf16.mxu0 %v583_v44  ;;  %2322 = vmatprep.mubr.bf16.mxu1 %v583_v44  ;;  %v4592_v44 = vld [vmem:[#allocation5 + $0x360] ss:$16 sps:$4 sm:$0xff]  }
 0x13d   :  { %2159 = vmatmul.mubr.bf16.vlgmr.msra.gmra.mrb[8].mxu0 %v582_v47  ;;  %2323 = vmatmul.mubr.bf16.vlgmr.msra.gmra.mrb[8].mxu1 %v582_v47  ;;  %v4600_v47 = vld [vmem:[#allocation5 + $0x384] ss:$16 sps:$4 sm:$0xff]  }
 0x13e   :  { %2168 = vmatpush1.bf16.msra.mxu0 %v4526_v45  ;;  %2332 = vmatpush1.bf16.msra.mxu1 %v4529_v46  ;;  %v4595_v45 = vld [vmem:[#allocation5 + $0x368] ss:$16 sps:$4 sm:$0xff]   ;;  %v506_v46 = vcombine.high %v5303_v15, %v5303_v15  ;;  %v507_v15 = vcombine.high %v5320_v43, %v5320_v43 }
 0x13f   :  { %2169 = vmatprep.subr.bf16.mxu0 %v4534_v48  ;;  %2333 = vmatprep.subr.bf16.mxu1 %v4537_v49  ;;  %v4603_v48 = vld [vmem:[#allocation5 + $0x38c] ss:$16 sps:$4 sm:$0xff]   ;;  %v5334_v49 = vrot.slane %v477_v42, %v5296_v11  ;;  %v4646_v42 = vld [vmem:[#allocation5 + $0x480] ss:$16 sps:$4 sm:$0xff]  }
 0x140   :  { %2199 = vmatprep.mubr.bf16.mxu0 %v585_v51  ;;  %2363 = vmatprep.mubr.bf16.mxu1 %v585_v51  ;;  %v4601_v51 = vld [vmem:[#allocation5 + $0x388] ss:$16 sps:$4 sm:$0xff]   ;;  %v525_v52 = vpack.i.b16 %v506_v46, %v506_v46  ;;  %v4657_v46 = vld [vmem:[#allocation5 + $0x4ac] ss:$16 sps:$4 sm:$0xff]  }
 0x142   :  { %2170 = vmatpush1.bf16.msra.mxu0 %v4532_v53  ;;  %2334 = vmatpush1.bf16.msra.mxu1 %v4535_v54  ;;  %v403_v60 = vpop.f32.mrb[4].mxu0  ;;  %v4609_v53 = vld [vmem:[#allocation5 + $0x3ac] ss:$16 sps:$4 sm:$0xff]   ;;  %v546_v54 = vpack.i.b16 %v5334_v49, %v5334_v49 }
 0x143   :  { %2171 = vmatprep.subr.bf16.mxu0 %v4540_v55  ;;  %2335 = vmatprep.subr.bf16.mxu1 %v4543_v56  ;;  %v455_v63 = vpack.c.bf16 %v403_v60, %v403_v60  ;;  %v5325_v1 = vpop.f32.mrb[5].mxu0  ;;  %v530_v55 = vrot.slane %v525_v52, %v5308_v18  ;;  %v4604_v56 = vld [vmem:[#allocation5 + $0x3a0] ss:$16 sps:$4 sm:$0xff]   ;;  %v4612_v60 = vld [vmem:[#allocation5 + $0x3c4] ss:$16 sps:$4 sm:$0xff]  }
 0x144   :  { %v407_v2 = vpop.f32.mrb[6].mxu0  ;;  %v456_v43 = vpack.c.bf16 %v5325_v1, %v5325_v1  ;;  %v4616_v1 = vld [vmem:[#allocation5 + $0x3e0] ss:$16 sps:$4 sm:$0xff]  }
 0x145   :  { %v5327_v3 = vadd.bf16 %v544_v57, %v455_v63  ;;  %v408_v4 = vpop.f32.mrb[7].mxu0  ;;  %v4607_v57 = vld [vmem:[#allocation5 + $0x3a8] ss:$16 sps:$4 sm:$0xff]   ;;  %v553_v63 = vpack.i.b16 %v507_v15, %v507_v15  ;;  %v4658_v52 = vld [vmem:[#allocation5 + $0x4c0] ss:$16 sps:$4 sm:$0xff]  }
 0x146   :  { %2172 = vmatpush1.bf16.msra.mxu0 %v4538_v58  ;;  %2336 = vmatpush1.bf16.msra.mxu1 %v4541_v59  ;;  %v444_v58 = vpop.f32.mrb[4].mxu1  ;;  %v453_v59 = vpack.c.bf16 %v5312_v32, %v5312_v32  ;;  %v551_v4 = vrot.slane %v546_v54, %v5308_v18  ;;  %v4610_v32 = vld [vmem:[#allocation5 + $0x3c0] ss:$16 sps:$4 sm:$0xff]   ;;  %v4669_v54 = vld [vmem:[#allocation5 + $0x4ec] ss:$16 sps:$4 sm:$0xff]  }
 0x147   :  { %2173 = vmatprep.subr.bf16.mxu0 %v4546_v61  ;;  %2337 = vmatprep.subr.bf16.mxu1 %v4549_v62  ;;  %v4615_v61 = vld [vmem:[#allocation5 + $0x3cc] ss:$16 sps:$4 sm:$0xff]   ;;  %v457_v62 = vpack.c.bf16 %v444_v58, %v444_v58  ;;  %v5343_v2 = vpop.f32.mrb[5].mxu1  ;;  %v4664_v15 = vld [vmem:[#allocation5 + $0x4e0] ss:$16 sps:$4 sm:$0xff]  }
 0x148   :  { %v4670_v58 = vld [vmem:[#allocation5 + $0x500] ss:$16 sps:$4 sm:$0xff]  }
 0x14a   :  { %2174 = vmatpush1.bf16.msra.mxu0 %v4544_v5  ;;  %2338 = vmatpush1.bf16.msra.mxu1 %v4547_v6  ;;  %v448_v5 = vpop.f32.mrb[6].mxu1  ;;  %v558_v6 = vrot.slane %v553_v63, %v5308_v18  ;;  %v4679_v63 = vld [vmem:[#allocation5 + $0x528] ss:$16 sps:$4 sm:$0xff]  }
 0x14b   :  { %2175 = vmatprep.subr.bf16.mxu0 %v4552_v7  ;;  %2339 = vmatprep.subr.bf16.mxu1 %v4555_v8  ;;  %v449_v7 = vpop.f32.mrb[7].mxu1  ;;  %v4613_v8 = vld [vmem:[#allocation5 + $0x3c8] ss:$16 sps:$4 sm:$0xff]   ;;  %v4682_v5 = vld [vmem:[#allocation5 + $0x540] ss:$16 sps:$4 sm:$0xff]  }
 0x14c   :  { %v4690_v7 = vld [vmem:[#allocation5 + $0x564] ss:$16 sps:$4 sm:$0xff]  }
 0x14e   :  { %2176 = vmatpush1.bf16.msra.mxu0 %v4550_v9  ;;  %2340 = vmatpush1.bf16.msra.mxu1 %v4553_v10  ;;  %v568_v9 = vadd.bf16 %v530_v55, %v453_v59  ;;  %v4618_v10 = vld [vmem:[#allocation5 + $0x3e4] ss:$16 sps:$4 sm:$0xff]   ;;  %v4667_v55 = vld [vmem:[#allocation5 + $0x4e8] ss:$16 sps:$4 sm:$0xff]  }
 0x14f   :  { %2177 = vmatprep.subr.bf16.mxu0 %v4558_v12  ;;  %2341 = vmatprep.subr.bf16.mxu1 %v4561_v13  ;;  %v4621_v12 = vld [vmem:[#allocation5 + $0x3ec] ss:$16 sps:$4 sm:$0xff]   ;;  %v5349_v13 = vadd.bf16 %v558_v6, %v457_v62  ;;  %v4673_v59 = vld [vmem:[#allocation5 + $0x508] ss:$16 sps:$4 sm:$0xff]   ;;  %v4676_v62 = vld [vmem:[#allocation5 + $0x520] ss:$16 sps:$4 sm:$0xff]  }
 0x150   :  { %v4685_v6 = vld [vmem:[#allocation5 + $0x548] ss:$16 sps:$4 sm:$0xff]  }
 0x152   :  { %2178 = vmatpush1.bf16.msra.mxu0 %v4556_v14  ;;  %2342 = vmatpush1.bf16.msra.mxu1 %v4559_v16  ;;  %v571_v14 = vadd.bf16 %v551_v4, %v456_v43  ;;  %v4619_v16 = vld [vmem:[#allocation5 + $0x3e8] ss:$16 sps:$4 sm:$0xff]   ;;  %v4684_v43 = vld [vmem:[#allocation5 + $0x544] ss:$16 sps:$4 sm:$0xff]   ;;  %v4687_v4 = vld [vmem:[#allocation5 + $0x54c] ss:$16 sps:$4 sm:$0xff]  }
 0x153   :  { %2179 = vmatprep.subr.bf16.mxu0 %v4564_v17  ;;  %2343 = vmatprep.subr.bf16.mxu1 %v4567_v19  ;;  %v576_v17 = vmul.bf16 1009007652, %v568_v9  ;;  %v4624_v19 = vld [vmem:[#allocation5 + $0x404] ss:$16 sps:$4 sm:$0xff]  }
 0x156   :  { %2180 = vmatpush1.bf16.msra.mxu0 %v4562_v20  ;;  %2344 = vmatpush1.bf16.msra.mxu1 %v4565_v21  ;;  %v4627_v20 = vld [vmem:[#allocation5 + $0x40c] ss:$16 sps:$4 sm:$0xff]   ;;  %v579_v21 = vmul.bf16 1009007652, %v571_v14 }
 0x157   :  { %2181 = vmatprep.subr.bf16.mxu0 %v4570_v22  ;;  %2345 = vmatprep.subr.bf16.mxu1 %v4573_v23  ;;  %v4622_v22 = vld [vmem:[#allocation5 + $0x400] ss:$16 sps:$4 sm:$0xff]   ;;  %v4625_v23 = vld [vmem:[#allocation5 + $0x408] ss:$16 sps:$4 sm:$0xff]  }
 0x15a   :  { %2182 = vmatpush1.bf16.msra.mxu0 %v4568_v24  ;;  %2346 = vmatpush1.bf16.msra.mxu1 %v4571_v25  ;;  %v584_v24 = vmax.bf16 %v576_v17, %v568_v9  ;;  %v4630_v25 = vld [vmem:[#allocation5 + $0x424] ss:$16 sps:$4 sm:$0xff]   ;;  %v4691_v9 = vld [vmem:[#allocation5 + $0x568] ss:$16 sps:$4 sm:$0xff]  }
 0x15b   :  { %2183 = vmatprep.subr.bf16.mxu0 %v4576_v26  ;;  %2347 = vmatprep.subr.bf16.mxu1 %v4579_v27  ;;  %v4633_v26 = vld [vmem:[#allocation5 + $0x42c] ss:$16 sps:$4 sm:$0xff]   ;;  %v587_v27 = vmax.bf16 %v579_v21, %v571_v14  ;;  %v509_v14 = vcombine.high %v5334_v49, %v5334_v49  ;;  %v4703_v17 = vld [vmem:[#allocation5 + $0x5a4] ss:$16 sps:$4 sm:$0xff]   ;;  %v4701_v21 = vld [vmem:[#allocation5 + $0x5a0] ss:$16 sps:$4 sm:$0xff]   ;;  %v458_v49 = vpack.c.bf16 %v5343_v2, %v5343_v2 }
 0x15c   :  { %v4721_v2 = vld [vmem:[#allocation5 + $0x604] ss:$16 sps:$4 sm:$0xff]  }
 0x15e   :  { %2184 = vmatpush1.bf16.msra.mxu0 %v4574_v28  ;;  %2348 = vmatpush1.bf16.msra.mxu1 %v4577_v29  ;;  %v4628_v28 = vld [vmem:[#allocation5 + $0x420] ss:$16 sps:$4 sm:$0xff]   ;;  %v4631_v29 = vld [vmem:[#allocation5 + $0x428] ss:$16 sps:$4 sm:$0xff]  }
 0x15f   :  { %2185 = vmatprep.subr.bf16.mxu0 %v4582_v30  ;;  %2349 = vmatprep.subr.bf16.mxu1 %v4585_v31  ;;  %v4636_v30 = vld [vmem:[#allocation5 + $0x444] ss:$16 sps:$4 sm:$0xff]   ;;  %v4639_v31 = vld [vmem:[#allocation5 + $0x44c] ss:$16 sps:$4 sm:$0xff]  }
 0x162   :  { %2186 = vmatpush1.bf16.msra.mxu0 %v4580_v33  ;;  %2350 = vmatpush1.bf16.msra.mxu1 %v4583_v34  ;;  %v4634_v33 = vld [vmem:[#allocation5 + $0x440] ss:$16 sps:$4 sm:$0xff]   ;;  %v4637_v34 = vld [vmem:[#allocation5 + $0x448] ss:$16 sps:$4 sm:$0xff]  }
 0x163   :  { %2187 = vmatprep.subr.bf16.mxu0 %v4588_v35  ;;  %2351 = vmatprep.subr.bf16.mxu1 %v4591_v36  ;;  %v4642_v35 = vld [vmem:[#allocation5 + $0x464] ss:$16 sps:$4 sm:$0xff]   ;;  %v4645_v36 = vld [vmem:[#allocation5 + $0x46c] ss:$16 sps:$4 sm:$0xff]  }
 0x166   :  { %2188 = vmatpush1.bf16.msra.mxu0 %v4586_v37  ;;  %2352 = vmatpush1.bf16.msra.mxu1 %v4589_v38  ;;  %v4640_v37 = vld [vmem:[#allocation5 + $0x460] ss:$16 sps:$4 sm:$0xff]   ;;  %v4643_v38 = vld [vmem:[#allocation5 + $0x468] ss:$16 sps:$4 sm:$0xff]  }
 0x167   :  { %2189 = vmatprep.subr.bf16.mxu0 %v4594_v40  ;;  %2353 = vmatprep.subr.bf16.mxu1 %v4597_v41  ;;  %v4648_v40 = vld [vmem:[#allocation5 + $0x484] ss:$16 sps:$4 sm:$0xff]   ;;  %v4651_v41 = vld [vmem:[#allocation5 + $0x48c] ss:$16 sps:$4 sm:$0xff]  }
 0x16a   :  { %2190 = vmatpush1.bf16.msra.mxu0 %v4592_v44  ;;  %2354 = vmatpush1.bf16.msra.mxu1 %v4595_v45  ;;  %v4649_v44 = vld [vmem:[#allocation5 + $0x488] ss:$16 sps:$4 sm:$0xff]   ;;  %v4654_v45 = vld [vmem:[#allocation5 + $0x4a4] ss:$16 sps:$4 sm:$0xff]  }
 0x16b   :  { %2191 = vmatprep.subr.bf16.mxu0 %v4600_v47  ;;  %2355 = vmatprep.subr.bf16.mxu1 %v4603_v48  ;;  %v4652_v47 = vld [vmem:[#allocation5 + $0x4a0] ss:$16 sps:$4 sm:$0xff]   ;;  %v4655_v48 = vld [vmem:[#allocation5 + $0x4a8] ss:$16 sps:$4 sm:$0xff]  }
 0x16e   :  { %2192 = vmatpush1.bf16.msra.mxu0 %v4598_v50  ;;  %2356 = vmatpush1.bf16.msra.mxu1 %v4601_v51  ;;  %v4660_v50 = vld [vmem:[#allocation5 + $0x4c4] ss:$16 sps:$4 sm:$0xff]   ;;  %v4663_v51 = vld [vmem:[#allocation5 + $0x4cc] ss:$16 sps:$4 sm:$0xff]  }
 0x16f   :  { %2193 = vmatprep.subr.bf16.mxu0 %v4606_v39  ;;  %2357 = vmatprep.subr.bf16.mxu1 %v4609_v53  ;;  %v4661_v39 = vld [vmem:[#allocation5 + $0x4c8] ss:$16 sps:$4 sm:$0xff]   ;;  %v4666_v53 = vld [vmem:[#allocation5 + $0x4e4] ss:$16 sps:$4 sm:$0xff]  }
 0x172   :  { %2194 = vmatpush1.bf16.msra.mxu0 %v4604_v56  ;;  %2358 = vmatpush1.bf16.msra.mxu1 %v4607_v57  ;;  %v4672_v56 = vld [vmem:[#allocation5 + $0x504] ss:$16 sps:$4 sm:$0xff]   ;;  %v4675_v57 = vld [vmem:[#allocation5 + $0x50c] ss:$16 sps:$4 sm:$0xff]  }
 0x173   :  { %2195 = vmatprep.subr.bf16.mxu0 %v4612_v60  ;;  %2359 = vmatprep.subr.bf16.mxu1 %v4615_v61  ;;  %v4678_v60 = vld [vmem:[#allocation5 + $0x524] ss:$16 sps:$4 sm:$0xff]   ;;  %v4681_v61 = vld [vmem:[#allocation5 + $0x52c] ss:$16 sps:$4 sm:$0xff]  }
 0x176   :  { %2196 = vmatpush1.bf16.msra.mxu0 %v4610_v32  ;;  %2360 = vmatpush1.bf16.msra.mxu1 %v4613_v8  ;;  %v4693_v32 = vld [vmem:[#allocation5 + $0x56c] ss:$16 sps:$4 sm:$0xff]   ;;  %v4688_v8 = vld [vmem:[#allocation5 + $0x560] ss:$16 sps:$4 sm:$0xff]  }
 0x177   :  { %2197 = vmatprep.subr.bf16.mxu0 %v4618_v10  ;;  %2361 = vmatprep.subr.bf16.mxu1 %v4621_v12  ;;  %v4696_v10 = vld [vmem:[#allocation5 + $0x584] ss:$16 sps:$4 sm:$0xff]   ;;  %v4699_v12 = vld [vmem:[#allocation5 + $0x58c] ss:$16 sps:$4 sm:$0xff]  }
 0x17a   :  { %2198 = vmatpush1.bf16.msra.mxu0 %v4616_v1  ;;  %2362 = vmatpush1.bf16.msra.mxu1 %v4619_v16  ;;  %v4694_v1 = vld [vmem:[#allocation5 + $0x580] ss:$16 sps:$4 sm:$0xff]   ;;  %v4697_v16 = vld [vmem:[#allocation5 + $0x588] ss:$16 sps:$4 sm:$0xff]  }
 0x17b   :  { %2208 = vmatprep.subr.bf16.mxu0 %v4624_v19  ;;  %2372 = vmatprep.subr.bf16.mxu1 %v4627_v20  ;;  %v4706_v19 = vld [vmem:[#allocation5 + $0x5ac] ss:$16 sps:$4 sm:$0xff]   ;;  %v560_v20 = vpack.i.b16 %v509_v14, %v509_v14 }
 0x17c   :  { %v4778_v14 = vld [vmem:[#allocation5 + $0x72c] ss:$16 sps:$4 sm:$0xff]  }
 0x17d   :  { %2200 = vmatmul.mubr.bf16.vlgmr.msra.gmra.mrb[8].mxu0 %v584_v24  ;;  %2364 = vmatmul.mubr.bf16.vlgmr.msra.gmra.mrb[8].mxu1 %v584_v24  ;;  %v4712_v24 = vld [vmem:[#allocation5 + $0x5cc] ss:$16 sps:$4 sm:$0xff]  }
 0x17e   :  { %2209 = vmatpush1.bf16.msra.mxu0 %v4622_v22  ;;  %2373 = vmatpush1.bf16.msra.mxu1 %v4625_v23  ;;  %v4704_v22 = vld [vmem:[#allocation5 + $0x5a8] ss:$16 sps:$4 sm:$0xff]   ;;  %v4709_v23 = vld [vmem:[#allocation5 + $0x5c4] ss:$16 sps:$4 sm:$0xff]  }
 0x17f   :  { %2210 = vmatprep.subr.bf16.mxu0 %v4630_v25  ;;  %2374 = vmatprep.subr.bf16.mxu1 %v4633_v26  ;;  %v565_v25 = vrot.slane %v560_v20, %v5308_v18  ;;  %v4707_v26 = vld [vmem:[#allocation5 + $0x5c0] ss:$16 sps:$4 sm:$0xff]  }
 0x180   :  { %2240 = vmatprep.mubr.bf16.mxu0 %v587_v27  ;;  %2404 = vmatprep.mubr.bf16.mxu1 %v587_v27  ;;  %v4710_v27 = vld [vmem:[#allocation5 + $0x5c8] ss:$16 sps:$4 sm:$0xff]   ;;  %v4779_v20 = vld [vmem:[#allocation5 + $0x740] ss:$16 sps:$4 sm:$0xff]  }
 0x182   :  { %2211 = vmatpush1.bf16.msra.mxu0 %v4628_v28  ;;  %2375 = vmatpush1.bf16.msra.mxu1 %v4631_v29  ;;  %v4715_v28 = vld [vmem:[#allocation5 + $0x5e4] ss:$16 sps:$4 sm:$0xff]   ;;  %v4718_v29 = vld [vmem:[#allocation5 + $0x5ec] ss:$16 sps:$4 sm:$0xff]  }
 0x183   :  { %2212 = vmatprep.subr.bf16.mxu0 %v4636_v30  ;;  %2376 = vmatprep.subr.bf16.mxu1 %v4639_v31  ;;  %v573_v30 = vadd.bf16 %v565_v25, %v458_v49  ;;  %v4713_v31 = vld [vmem:[#allocation5 + $0x5e0] ss:$16 sps:$4 sm:$0xff]   ;;  %v4788_v49 = vld [vmem:[#allocation5 + $0x768] ss:$16 sps:$4 sm:$0xff]   ;;  %v4793_v25 = vld [vmem:[#allocation5 + $0x784] ss:$16 sps:$4 sm:$0xff]  }
 0x186   :  { %2213 = vmatpush1.bf16.msra.mxu0 %v4634_v33  ;;  %2377 = vmatpush1.bf16.msra.mxu1 %v4637_v34  ;;  %v4716_v33 = vld [vmem:[#allocation5 + $0x5e8] ss:$16 sps:$4 sm:$0xff]   ;;  %v578_v34 = vmul.bf16 1009007652, %v5327_v3 }
 0x187   :  { %2214 = vmatprep.subr.bf16.mxu0 %v4642_v35  ;;  %2378 = vmatprep.subr.bf16.mxu1 %v4645_v36  ;;  %v4724_v35 = vld [vmem:[#allocation5 + $0x60c] ss:$16 sps:$4 sm:$0xff]   ;;  %v581_v36 = vmul.bf16 1009007652, %v573_v30 }
 0x18a   :  { %2215 = vmatpush1.bf16.msra.mxu0 %v4640_v37  ;;  %2379 = vmatpush1.bf16.msra.mxu1 %v4643_v38  ;;  %v4719_v37 = vld [vmem:[#allocation5 + $0x600] ss:$16 sps:$4 sm:$0xff]   ;;  %v4722_v38 = vld [vmem:[#allocation5 + $0x608] ss:$16 sps:$4 sm:$0xff]  }
 0x18b   :  { %2216 = vmatprep.subr.bf16.mxu0 %v4648_v40  ;;  %2380 = vmatprep.subr.bf16.mxu1 %v4651_v41  ;;  %v586_v40 = vmax.bf16 %v578_v34, %v5327_v3  ;;  %v4727_v41 = vld [vmem:[#allocation5 + $0x624] ss:$16 sps:$4 sm:$0xff]   ;;  %v4731_v3 = vld [vmem:[#allocation5 + $0x640] ss:$16 sps:$4 sm:$0xff]  }
 0x18c   :  { %v4805_v34 = vld [vmem:[#allocation5 + $0x7c4] ss:$16 sps:$4 sm:$0xff]  }
 0x18e   :  { %2217 = vmatpush1.bf16.msra.mxu0 %v4646_v42  ;;  %2381 = vmatpush1.bf16.msra.mxu1 %v4649_v44  ;;  %v4730_v42 = vld [vmem:[#allocation5 + $0x62c] ss:$16 sps:$4 sm:$0xff]   ;;  %v589_v44 = vmax.bf16 %v581_v36, %v573_v30  ;;  %v4806_v36 = vld [vmem:[#allocation5 + $0x7c8] ss:$16 sps:$4 sm:$0xff]  }
 0x18f   :  { %2218 = vmatprep.subr.bf16.mxu0 %v4654_v45  ;;  %2382 = vmatprep.subr.bf16.mxu1 %v4657_v46  ;;  %v4725_v45 = vld [vmem:[#allocation5 + $0x620] ss:$16 sps:$4 sm:$0xff]   ;;  %v4728_v46 = vld [vmem:[#allocation5 + $0x628] ss:$16 sps:$4 sm:$0xff]   ;;  %v4802_v30 = vld [vmem:[#allocation5 + $0x7ac] ss:$16 sps:$4 sm:$0xff]  }
 0x192   :  { %2219 = vmatpush1.bf16.msra.mxu0 %v4652_v47  ;;  %2383 = vmatpush1.bf16.msra.mxu1 %v4655_v48  ;;  %v4733_v47 = vld [vmem:[#allocation5 + $0x644] ss:$16 sps:$4 sm:$0xff]   ;;  %v4736_v48 = vld [vmem:[#allocation5 + $0x64c] ss:$16 sps:$4 sm:$0xff]  }
 0x193   :  { %2220 = vmatprep.subr.bf16.mxu0 %v4660_v50  ;;  %2384 = vmatprep.subr.bf16.mxu1 %v4663_v51  ;;  %v4734_v50 = vld [vmem:[#allocation5 + $0x648] ss:$16 sps:$4 sm:$0xff]   ;;  %v4739_v51 = vld [vmem:[#allocation5 + $0x664] ss:$16 sps:$4 sm:$0xff]  }
 0x196   :  { %2221 = vmatpush1.bf16.msra.mxu0 %v4658_v52  ;;  %2385 = vmatpush1.bf16.msra.mxu1 %v4661_v39  ;;  %v4742_v52 = vld [vmem:[#allocation5 + $0x66c] ss:$16 sps:$4 sm:$0xff]   ;;  %v4737_v39 = vld [vmem:[#allocation5 + $0x660] ss:$16 sps:$4 sm:$0xff]  }
 0x197   :  { %2222 = vmatprep.subr.bf16.mxu0 %v4666_v53  ;;  %2386 = vmatprep.subr.bf16.mxu1 %v4669_v54  ;;  %v4740_v53 = vld [vmem:[#allocation5 + $0x668] ss:$16 sps:$4 sm:$0xff]   ;;  %v4745_v54 = vld [vmem:[#allocation5 + $0x684] ss:$16 sps:$4 sm:$0xff]  }
 0x19a   :  { %2223 = vmatpush1.bf16.msra.mxu0 %v4664_v15  ;;  %2387 = vmatpush1.bf16.msra.mxu1 %v4667_v55  ;;  %v4748_v15 = vld [vmem:[#allocation5 + $0x68c] ss:$16 sps:$4 sm:$0xff]   ;;  %v4743_v55 = vld [vmem:[#allocation5 + $0x680] ss:$16 sps:$4 sm:$0xff]  }
 0x19b   :  { %2224 = vmatprep.subr.bf16.mxu0 %v4672_v56  ;;  %2388 = vmatprep.subr.bf16.mxu1 %v4675_v57  ;;  %v4746_v56 = vld [vmem:[#allocation5 + $0x688] ss:$16 sps:$4 sm:$0xff]   ;;  %v4751_v57 = vld [vmem:[#allocation5 + $0x6a4] ss:$16 sps:$4 sm:$0xff]  }
 0x19e   :  { %2225 = vmatpush1.bf16.msra.mxu0 %v4670_v58  ;;  %2389 = vmatpush1.bf16.msra.mxu1 %v4673_v59  ;;  %v4754_v58 = vld [vmem:[#allocation5 + $0x6ac] ss:$16 sps:$4 sm:$0xff]   ;;  %v4749_v59 = vld [vmem:[#allocation5 + $0x6a0] ss:$16 sps:$4 sm:$0xff]  }
 0x19f   :  { %2226 = vmatprep.subr.bf16.mxu0 %v4678_v60  ;;  %2390 = vmatprep.subr.bf16.mxu1 %v4681_v61  ;;  %v4752_v60 = vld [vmem:[#allocation5 + $0x6a8] ss:$16 sps:$4 sm:$0xff]   ;;  %v4757_v61 = vld [vmem:[#allocation5 + $0x6c4] ss:$16 sps:$4 sm:$0xff]  }
 0x1a2   :  { %2227 = vmatpush1.bf16.msra.mxu0 %v4676_v62  ;;  %2391 = vmatpush1.bf16.msra.mxu1 %v4679_v63  ;;  %v4760_v62 = vld [vmem:[#allocation5 + $0x6cc] ss:$16 sps:$4 sm:$0xff]   ;;  %v4755_v63 = vld [vmem:[#allocation5 + $0x6c0] ss:$16 sps:$4 sm:$0xff]  }
 0x1a3   :  { %2228 = vmatprep.subr.bf16.mxu0 %v4684_v43  ;;  %2392 = vmatprep.subr.bf16.mxu1 %v4687_v4  ;;  %v4758_v43 = vld [vmem:[#allocation5 + $0x6c8] ss:$16 sps:$4 sm:$0xff]   ;;  %v4763_v4 = vld [vmem:[#allocation5 + $0x6e4] ss:$16 sps:$4 sm:$0xff]  }
 0x1a6   :  { %2229 = vmatpush1.bf16.msra.mxu0 %v4682_v5  ;;  %2393 = vmatpush1.bf16.msra.mxu1 %v4685_v6  ;;  %v4766_v5 = vld [vmem:[#allocation5 + $0x6ec] ss:$16 sps:$4 sm:$0xff]   ;;  %v4761_v6 = vld [vmem:[#allocation5 + $0x6e0] ss:$16 sps:$4 sm:$0xff]  }
 0x1a7   :  { %2230 = vmatprep.subr.bf16.mxu0 %v4690_v7  ;;  %2394 = vmatprep.subr.bf16.mxu1 %v4693_v32  ;;  %v4764_v7 = vld [vmem:[#allocation5 + $0x6e8] ss:$16 sps:$4 sm:$0xff]   ;;  %v4769_v32 = vld [vmem:[#allocation5 + $0x704] ss:$16 sps:$4 sm:$0xff]  }
 0x1aa   :  { %2231 = vmatpush1.bf16.msra.mxu0 %v4688_v8  ;;  %2395 = vmatpush1.bf16.msra.mxu1 %v4691_v9  ;;  %v4772_v8 = vld [vmem:[#allocation5 + $0x70c] ss:$16 sps:$4 sm:$0xff]   ;;  %v4767_v9 = vld [vmem:[#allocation5 + $0x700] ss:$16 sps:$4 sm:$0xff]  }
 0x1ab   :  { %2232 = vmatprep.subr.bf16.mxu0 %v4696_v10  ;;  %2396 = vmatprep.subr.bf16.mxu1 %v4699_v12  ;;  %v4770_v10 = vld [vmem:[#allocation5 + $0x708] ss:$16 sps:$4 sm:$0xff]   ;;  %v4775_v12 = vld [vmem:[#allocation5 + $0x724] ss:$16 sps:$4 sm:$0xff]  }
 0x1ae   :  { %2233 = vmatpush1.bf16.msra.mxu0 %v4694_v1  ;;  %2397 = vmatpush1.bf16.msra.mxu1 %v4697_v16  ;;  %v4773_v1 = vld [vmem:[#allocation5 + $0x720] ss:$16 sps:$4 sm:$0xff]   ;;  %v4776_v16 = vld [vmem:[#allocation5 + $0x728] ss:$16 sps:$4 sm:$0xff]  }
 0x1af   :  { %2234 = vmatprep.subr.bf16.mxu0 %v4703_v17  ;;  %2398 = vmatprep.subr.bf16.mxu1 %v4706_v19  ;;  %v4781_v17 = vld [vmem:[#allocation5 + $0x744] ss:$16 sps:$4 sm:$0xff]   ;;  %v4784_v19 = vld [vmem:[#allocation5 + $0x74c] ss:$16 sps:$4 sm:$0xff]  }
 0x1b2   :  { %2235 = vmatpush1.bf16.msra.mxu0 %v4701_v21  ;;  %2399 = vmatpush1.bf16.msra.mxu1 %v4704_v22  ;;  %v4782_v21 = vld [vmem:[#allocation5 + $0x748] ss:$16 sps:$4 sm:$0xff]   ;;  %v4787_v22 = vld [vmem:[#allocation5 + $0x764] ss:$16 sps:$4 sm:$0xff]  }
 0x1b3   :  { %2236 = vmatprep.subr.bf16.mxu0 %v4709_v23  ;;  %2400 = vmatprep.subr.bf16.mxu1 %v4712_v24  ;;  %v4790_v23 = vld [vmem:[#allocation5 + $0x76c] ss:$16 sps:$4 sm:$0xff]   ;;  %v4785_v24 = vld [vmem:[#allocation5 + $0x760] ss:$16 sps:$4 sm:$0xff]  }
 0x1b6   :  { %2237 = vmatpush1.bf16.msra.mxu0 %v4707_v26  ;;  %2401 = vmatpush1.bf16.msra.mxu1 %v4710_v27  ;;  %v4796_v26 = vld [vmem:[#allocation5 + $0x78c] ss:$16 sps:$4 sm:$0xff]   ;;  %v4791_v27 = vld [vmem:[#allocation5 + $0x780] ss:$16 sps:$4 sm:$0xff]  }
 0x1b7   :  { %2238 = vmatprep.subr.bf16.mxu0 %v4715_v28  ;;  %2402 = vmatprep.subr.bf16.mxu1 %v4718_v29  ;;  %v4794_v28 = vld [vmem:[#allocation5 + $0x788] ss:$16 sps:$4 sm:$0xff]   ;;  %v4799_v29 = vld [vmem:[#allocation5 + $0x7a4] ss:$16 sps:$4 sm:$0xff]  }
 0x1ba   :  { %2239 = vmatpush1.bf16.msra.mxu0 %v4713_v31  ;;  %2403 = vmatpush1.bf16.msra.mxu1 %v4716_v33  ;;  %v4797_v31 = vld [vmem:[#allocation5 + $0x7a0] ss:$16 sps:$4 sm:$0xff]   ;;  %v4800_v33 = vld [vmem:[#allocation5 + $0x7a8] ss:$16 sps:$4 sm:$0xff]  }
 0x1bb   :  { %2249 = vmatprep.subr.bf16.mxu0 %v4721_v2  ;;  %2413 = vmatprep.subr.bf16.mxu1 %v4724_v35  ;;  %v4808_v2 = vld [vmem:[#allocation5 + $0x7cc] ss:$16 sps:$4 sm:$0xff]   ;;  %v4803_v35 = vld [vmem:[#allocation5 + $0x7c0] ss:$16 sps:$4 sm:$0xff]  }
 0x1bd   :  { %2241 = vmatmul.mubr.bf16.vlgmr.msra.gmra.mrb[8].mxu0 %v586_v40  ;;  %2405 = vmatmul.mubr.bf16.vlgmr.msra.gmra.mrb[8].mxu1 %v586_v40  ;;  %v4809_v40 = vld [vmem:[#allocation5 + $0x7e0] ss:$16 sps:$4 sm:$0xff]  }
 0x1be   :  { %2250 = vmatpush1.bf16.msra.mxu0 %v4719_v37  ;;  %2414 = vmatpush1.bf16.msra.mxu1 %v4722_v38  ;;  %v4811_v37 = vld [vmem:[#allocation5 + $0x7e4] ss:$16 sps:$4 sm:$0xff]   ;;  %v4814_v38 = vld [vmem:[#allocation5 + $0x7ec] ss:$16 sps:$4 sm:$0xff]  }
 0x1bf   :  { %2251 = vmatprep.subr.bf16.mxu0 %v4727_v41  ;;  %2415 = vmatprep.subr.bf16.mxu1 %v4730_v42  ;;  %v4812_v41 = vld [vmem:[#allocation5 + $0x7e8] ss:$16 sps:$4 sm:$0xff]   ;;  %v580_v42 = vmul.bf16 1009007652, %v5349_v13 }
 0x1c0   :  { %2281 = vmatprep.mubr.bf16.mxu0 %v589_v44  ;;  %2445 = vmatprep.mubr.bf16.mxu1 %v589_v44  ;;  %v4817_v44 = vld [vmem:[#allocation7 + $0x4] ss:$16 sps:$4 sm:$0xff]  }
 0x1c2   :  { %2252 = vmatpush1.bf16.msra.mxu0 %v4725_v45  ;;  %2416 = vmatpush1.bf16.msra.mxu1 %v4728_v46  ;;  %v4820_v45 = vld [vmem:[#allocation7 + $0xc] ss:$16 sps:$4 sm:$0xff]   ;;  %v4815_v46 = vld [vmem:[#allocation7] ss:$16 sps:$4 sm:$0xff]  }
 0x1c3   :  { %2253 = vmatprep.subr.bf16.mxu0 %v4733_v47  ;;  %2417 = vmatprep.subr.bf16.mxu1 %v4736_v48  ;;  %v4818_v47 = vld [vmem:[#allocation7 + $0x8] ss:$16 sps:$4 sm:$0xff]   ;;  %v588_v48 = vmax.bf16 %v580_v42, %v5349_v13  ;;  %v4835_v13 = vld [vmem:[#allocation7 + $0x64] ss:$16 sps:$4 sm:$0xff]  }
 0x1c4   :  { %v4902_v42 = vld [vmem:[#allocation7 + $0x1c8] ss:$16 sps:$4 sm:$0xff]  }
 0x1c6   :  { %2254 = vmatpush1.bf16.msra.mxu0 %v4731_v3  ;;  %2418 = vmatpush1.bf16.msra.mxu1 %v4734_v50  ;;  %v4823_v3 = vld [vmem:[#allocation7 + $0x24] ss:$16 sps:$4 sm:$0xff]   ;;  %v4826_v50 = vld [vmem:[#allocation7 + $0x2c] ss:$16 sps:$4 sm:$0xff]  }
 0x1c7   :  { %2255 = vmatprep.subr.bf16.mxu0 %v4739_v51  ;;  %2419 = vmatprep.subr.bf16.mxu1 %v4742_v52  ;;  %v4821_v51 = vld [vmem:[#allocation7 + $0x20] ss:$16 sps:$4 sm:$0xff]   ;;  %v4824_v52 = vld [vmem:[#allocation7 + $0x28] ss:$16 sps:$4 sm:$0xff]  }
 0x1ca   :  { %2256 = vmatpush1.bf16.msra.mxu0 %v4737_v39  ;;  %2420 = vmatpush1.bf16.msra.mxu1 %v4740_v53  ;;  %v4829_v39 = vld [vmem:[#allocation7 + $0x44] ss:$16 sps:$4 sm:$0xff]   ;;  %v4832_v53 = vld [vmem:[#allocation7 + $0x4c] ss:$16 sps:$4 sm:$0xff]  }
 0x1cb   :  { %2257 = vmatprep.subr.bf16.mxu0 %v4745_v54  ;;  %2421 = vmatprep.subr.bf16.mxu1 %v4748_v15  ;;  %v4827_v54 = vld [vmem:[#allocation7 + $0x40] ss:$16 sps:$4 sm:$0xff]   ;;  %v4830_v15 = vld [vmem:[#allocation7 + $0x48] ss:$16 sps:$4 sm:$0xff]  }
 0x1ce   :  { %2258 = vmatpush1.bf16.msra.mxu0 %v4743_v55  ;;  %2422 = vmatpush1.bf16.msra.mxu1 %v4746_v56  ;;  %v4838_v55 = vld [vmem:[#allocation7 + $0x6c] ss:$16 sps:$4 sm:$0xff]   ;;  %v4833_v56 = vld [vmem:[#allocation7 + $0x60] ss:$16 sps:$4 sm:$0xff]  }
 0x1cf   :  { %2259 = vmatprep.subr.bf16.mxu0 %v4751_v57  ;;  %2423 = vmatprep.subr.bf16.mxu1 %v4754_v58  ;;  %v4836_v57 = vld [vmem:[#allocation7 + $0x68] ss:$16 sps:$4 sm:$0xff]   ;;  %v4841_v58 = vld [vmem:[#allocation7 + $0x84] ss:$16 sps:$4 sm:$0xff]  }
 0x1d2   :  { %2260 = vmatpush1.bf16.msra.mxu0 %v4749_v59  ;;  %2424 = vmatpush1.bf16.msra.mxu1 %v4752_v60  ;;  %v4844_v59 = vld [vmem:[#allocation7 + $0x8c] ss:$16 sps:$4 sm:$0xff]   ;;  %v4839_v60 = vld [vmem:[#allocation7 + $0x80] ss:$16 sps:$4 sm:$0xff]  }
 0x1d3   :  { %2261 = vmatprep.subr.bf16.mxu0 %v4757_v61  ;;  %2425 = vmatprep.subr.bf16.mxu1 %v4760_v62  ;;  %v4842_v61 = vld [vmem:[#allocation7 + $0x88] ss:$16 sps:$4 sm:$0xff]   ;;  %v4847_v62 = vld [vmem:[#allocation7 + $0xa4] ss:$16 sps:$4 sm:$0xff]  }
 0x1d6   :  { %2262 = vmatpush1.bf16.msra.mxu0 %v4755_v63  ;;  %2426 = vmatpush1.bf16.msra.mxu1 %v4758_v43  ;;  %v4850_v63 = vld [vmem:[#allocation7 + $0xac] ss:$16 sps:$4 sm:$0xff]   ;;  %v4845_v43 = vld [vmem:[#allocation7 + $0xa0] ss:$16 sps:$4 sm:$0xff]  }
 0x1d7   :  { %2263 = vmatprep.subr.bf16.mxu0 %v4763_v4  ;;  %2427 = vmatprep.subr.bf16.mxu1 %v4766_v5  ;;  %v4848_v4 = vld [vmem:[#allocation7 + $0xa8] ss:$16 sps:$4 sm:$0xff]   ;;  %v4853_v5 = vld [vmem:[#allocation7 + $0xc4] ss:$16 sps:$4 sm:$0xff]  }
 0x1da   :  { %2264 = vmatpush1.bf16.msra.mxu0 %v4761_v6  ;;  %2428 = vmatpush1.bf16.msra.mxu1 %v4764_v7  ;;  %v4856_v6 = vld [vmem:[#allocation7 + $0xcc] ss:$16 sps:$4 sm:$0xff]   ;;  %v4851_v7 = vld [vmem:[#allocation7 + $0xc0] ss:$16 sps:$4 sm:$0xff]  }
 0x1db   :  { %2265 = vmatprep.subr.bf16.mxu0 %v4769_v32  ;;  %2429 = vmatprep.subr.bf16.mxu1 %v4772_v8  ;;  %v4854_v32 = vld [vmem:[#allocation7 + $0xc8] ss:$16 sps:$4 sm:$0xff]   ;;  %v4859_v8 = vld [vmem:[#allocation7 + $0xe4] ss:$16 sps:$4 sm:$0xff]  }
 0x1de   :  { %2266 = vmatpush1.bf16.msra.mxu0 %v4767_v9  ;;  %2430 = vmatpush1.bf16.msra.mxu1 %v4770_v10  ;;  %v4862_v9 = vld [vmem:[#allocation7 + $0xec] ss:$16 sps:$4 sm:$0xff]   ;;  %v4857_v10 = vld [vmem:[#allocation7 + $0xe0] ss:$16 sps:$4 sm:$0xff]  }
 0x1df   :  { %2267 = vmatprep.subr.bf16.mxu0 %v4775_v12  ;;  %2431 = vmatprep.subr.bf16.mxu1 %v4778_v14  ;;  %v4860_v12 = vld [vmem:[#allocation7 + $0xe8] ss:$16 sps:$4 sm:$0xff]   ;;  %v4865_v14 = vld [vmem:[#allocation7 + $0x104] ss:$16 sps:$4 sm:$0xff]  }
 0x1e2   :  { %2268 = vmatpush1.bf16.msra.mxu0 %v4773_v1  ;;  %2432 = vmatpush1.bf16.msra.mxu1 %v4776_v16  ;;  %v4868_v1 = vld [vmem:[#allocation7 + $0x10c] ss:$16 sps:$4 sm:$0xff]   ;;  %v4863_v16 = vld [vmem:[#allocation7 + $0x100] ss:$16 sps:$4 sm:$0xff]  }
 0x1e3   :  { %2269 = vmatprep.subr.bf16.mxu0 %v4781_v17  ;;  %2433 = vmatprep.subr.bf16.mxu1 %v4784_v19  ;;  %v4866_v17 = vld [vmem:[#allocation7 + $0x108] ss:$16 sps:$4 sm:$0xff]   ;;  %v4871_v19 = vld [vmem:[#allocation7 + $0x124] ss:$16 sps:$4 sm:$0xff]  }
 0x1e6   :  { %2270 = vmatpush1.bf16.msra.mxu0 %v4779_v20  ;;  %2434 = vmatpush1.bf16.msra.mxu1 %v4782_v21  ;;  %v4874_v20 = vld [vmem:[#allocation7 + $0x12c] ss:$16 sps:$4 sm:$0xff]   ;;  %v4869_v21 = vld [vmem:[#allocation7 + $0x120] ss:$16 sps:$4 sm:$0xff]  }
 0x1e7   :  { %2271 = vmatprep.subr.bf16.mxu0 %v4787_v22  ;;  %2435 = vmatprep.subr.bf16.mxu1 %v4790_v23  ;;  %v4872_v22 = vld [vmem:[#allocation7 + $0x128] ss:$16 sps:$4 sm:$0xff]   ;;  %v4877_v23 = vld [vmem:[#allocation7 + $0x144] ss:$16 sps:$4 sm:$0xff]  }
 0x1ea   :  { %2272 = vmatpush1.bf16.msra.mxu0 %v4785_v24  ;;  %2436 = vmatpush1.bf16.msra.mxu1 %v4788_v49  ;;  %v4880_v24 = vld [vmem:[#allocation7 + $0x14c] ss:$16 sps:$4 sm:$0xff]   ;;  %v4875_v49 = vld [vmem:[#allocation7 + $0x140] ss:$16 sps:$4 sm:$0xff]  }
 0x1eb   :  { %2273 = vmatprep.subr.bf16.mxu0 %v4793_v25  ;;  %2437 = vmatprep.subr.bf16.mxu1 %v4796_v26  ;;  %v4878_v25 = vld [vmem:[#allocation7 + $0x148] ss:$16 sps:$4 sm:$0xff]   ;;  %v4883_v26 = vld [vmem:[#allocation7 + $0x164] ss:$16 sps:$4 sm:$0xff]  }
 0x1ee   :  { %2274 = vmatpush1.bf16.msra.mxu0 %v4791_v27  ;;  %2438 = vmatpush1.bf16.msra.mxu1 %v4794_v28  ;;  %v4886_v27 = vld [vmem:[#allocation7 + $0x16c] ss:$16 sps:$4 sm:$0xff]   ;;  %v4881_v28 = vld [vmem:[#allocation7 + $0x160] ss:$16 sps:$4 sm:$0xff]  }
 0x1ef   :  { %2275 = vmatprep.subr.bf16.mxu0 %v4799_v29  ;;  %2439 = vmatprep.subr.bf16.mxu1 %v4802_v30  ;;  %v4884_v29 = vld [vmem:[#allocation7 + $0x168] ss:$16 sps:$4 sm:$0xff]   ;;  %v4889_v30 = vld [vmem:[#allocation7 + $0x184] ss:$16 sps:$4 sm:$0xff]  }
 0x1f2   :  { %2276 = vmatpush1.bf16.msra.mxu0 %v4797_v31  ;;  %2440 = vmatpush1.bf16.msra.mxu1 %v4800_v33  ;;  %v4892_v31 = vld [vmem:[#allocation7 + $0x18c] ss:$16 sps:$4 sm:$0xff]   ;;  %v4887_v33 = vld [vmem:[#allocation7 + $0x180] ss:$16 sps:$4 sm:$0xff]  }
 0x1f3   :  { %2277 = vmatprep.subr.bf16.mxu0 %v4805_v34  ;;  %2441 = vmatprep.subr.bf16.mxu1 %v4808_v2  ;;  %v4890_v34 = vld [vmem:[#allocation7 + $0x188] ss:$16 sps:$4 sm:$0xff]   ;;  %v4895_v2 = vld [vmem:[#allocation7 + $0x1a4] ss:$16 sps:$4 sm:$0xff]  }
 0x1f6   :  { %2278 = vmatpush1.bf16.msra.mxu0 %v4803_v35  ;;  %2442 = vmatpush1.bf16.msra.mxu1 %v4806_v36  ;;  %v4898_v35 = vld [vmem:[#allocation7 + $0x1ac] ss:$16 sps:$4 sm:$0xff]   ;;  %v4893_v36 = vld [vmem:[#allocation7 + $0x1a0] ss:$16 sps:$4 sm:$0xff]  }
 0x1f7   :  { %2279 = vmatprep.subr.bf16.mxu0 %v4811_v37  ;;  %2443 = vmatprep.subr.bf16.mxu1 %v4814_v38  ;;  %v4896_v37 = vld [vmem:[#allocation7 + $0x1a8] ss:$16 sps:$4 sm:$0xff]   ;;  %v4901_v38 = vld [vmem:[#allocation7 + $0x1c4] ss:$16 sps:$4 sm:$0xff]  }
 0x1fa   :  { %2280 = vmatpush1.bf16.msra.mxu0 %v4809_v40  ;;  %2444 = vmatpush1.bf16.msra.mxu1 %v4812_v41  ;;  %v4904_v40 = vld [vmem:[#allocation7 + $0x1cc] ss:$16 sps:$4 sm:$0xff]   ;;  %v4899_v41 = vld [vmem:[#allocation7 + $0x1c0] ss:$16 sps:$4 sm:$0xff]  }
 0x1fb   :  { %3288 = vmatprep.subr.bf16.mxu0 %v4817_v44  ;;  %3370 = vmatprep.subr.bf16.mxu1 %v4820_v45  ;;  %v4907_v44 = vld [vmem:[#allocation7 + $0x1e4] ss:$16 sps:$4 sm:$0xff]   ;;  %v4910_v45 = vld [vmem:[#allocation7 + $0x1ec] ss:$16 sps:$4 sm:$0xff]  }
 0x1fd   :  { %2282 = vmatmul.mubr.bf16.vlgmr.msra.gmra.mrb[8].mxu0 %v588_v48  ;;  %2446 = vmatmul.mubr.bf16.vlgmr.msra.gmra.mrb[8].mxu1 %v588_v48  ;;  %v4913_v48 = vld [vmem:[#allocation7 + $0x204] ss:$16 sps:$4 sm:$0xff]  }
 0x1fe   :  { %3289 = vmatpush1.bf16.msra.mxu0 %v4815_v46  ;;  %3371 = vmatpush1.bf16.msra.mxu1 %v4818_v47  ;;  %v4905_v46 = vld [vmem:[#allocation7 + $0x1e0] ss:$16 sps:$4 sm:$0xff]   ;;  %v4908_v47 = vld [vmem:[#allocation7 + $0x1e8] ss:$16 sps:$4 sm:$0xff]  }
 0x1ff   :  { %3290 = vmatprep.subr.bf16.mxu0 %v4823_v3  ;;  %3372 = vmatprep.subr.bf16.mxu1 %v4826_v50  ;;  %v4916_v3 = vld [vmem:[#allocation7 + $0x20c] ss:$16 sps:$4 sm:$0xff]   ;;  %v4177_v50 = vld.sshfl [vmem:[%s5415_s4] sm:$0x33 pattern:$0x75316420] }
 0x202   :  { %3291 = vmatpush1.bf16.msra.mxu0 %v4821_v51  ;;  %3373 = vmatpush1.bf16.msra.mxu1 %v4824_v52  ;;  %v2467_v51 = vcombine.high %v4177_v50, %v4177_v50 }
 0x203   :  { %3292 = vmatprep.subr.bf16.mxu0 %v4829_v39  ;;  %3374 = vmatprep.subr.bf16.mxu1 %v4832_v53  ;;  %v5365_v39 = vrot.slane %v4177_v50, %v5296_v11  ;;  %v4962_v50 = vld [vmem:[#allocation7 + $0x308] ss:$16 sps:$4 sm:$0xff]  }
 0x204   :  { %v2481_v52 = vrot.slane %v2467_v51, %v5296_v11  ;;  %v4967_v51 = vld [vmem:[#allocation7 + $0x324] ss:$16 sps:$4 sm:$0xff]  }
 0x206   :  { %3293 = vmatpush1.bf16.msra.mxu0 %v4827_v54  ;;  %3375 = vmatpush1.bf16.msra.mxu1 %v4830_v15  ;;  %v2483_v53 = vcombine.high %v2481_v52, %v2481_v52  ;;  %v2485_v54 = vpack.i.b16 %v5365_v39, %v5365_v39  ;;  %v2492_v15 = vpack.i.b16 %v2481_v52, %v2481_v52  ;;  %v4970_v52 = vld [vmem:[#allocation7 + $0x32c] ss:$16 sps:$4 sm:$0xff]  }
 0x207   :  { %3294 = vmatprep.subr.bf16.mxu0 %v4835_v13  ;;  %3376 = vmatprep.subr.bf16.mxu1 %v4838_v55 }
 0x208   :  { %v2506_v13 = vpack.i.b16 %v2483_v53, %v2483_v53  ;;  %v2490_v55 = vrot.slane %v2485_v54, %v5308_v18  ;;  %v4965_v53 = vld [vmem:[#allocation7 + $0x320] ss:$16 sps:$4 sm:$0xff]   ;;  %v4968_v54 = vld [vmem:[#allocation7 + $0x328] ss:$16 sps:$4 sm:$0xff]  }
 0x20a   :  { %3295 = vmatpush1.bf16.msra.mxu0 %v4833_v56  ;;  %3377 = vmatpush1.bf16.msra.mxu1 %v4836_v57 }
 0x20b   :  { %3296 = vmatprep.subr.bf16.mxu0 %v4841_v58  ;;  %3378 = vmatprep.subr.bf16.mxu1 %v4844_v59  ;;  %v2497_v58 = vrot.slane %v2492_v15, %v5308_v18  ;;  %v4973_v15 = vld [vmem:[#allocation7 + $0x344] ss:$16 sps:$4 sm:$0xff]  }
 0x20e   :  { %3297 = vmatpush1.bf16.msra.mxu0 %v4839_v60  ;;  %3379 = vmatpush1.bf16.msra.mxu1 %v4842_v61 }
 0x20f   :  { %3298 = vmatprep.subr.bf16.mxu0 %v4847_v62  ;;  %3380 = vmatprep.subr.bf16.mxu1 %v4850_v63  ;;  %v2511_v62 = vrot.slane %v2506_v13, %v5308_v18  ;;  %v4976_v13 = vld [vmem:[#allocation7 + $0x34c] ss:$16 sps:$4 sm:$0xff]  }
 0x212   :  { %3299 = vmatpush1.bf16.msra.mxu0 %v4845_v43  ;;  %3381 = vmatpush1.bf16.msra.mxu1 %v4848_v4 }
 0x213   :  { %3300 = vmatprep.subr.bf16.mxu0 %v4853_v5  ;;  %3382 = vmatprep.subr.bf16.mxu1 %v4856_v6 }
 0x216   :  { %3301 = vmatpush1.bf16.msra.mxu0 %v4851_v7  ;;  %3383 = vmatpush1.bf16.msra.mxu1 %v4854_v32 }
 0x217   :  { %3302 = vmatprep.subr.bf16.mxu0 %v4859_v8  ;;  %3384 = vmatprep.subr.bf16.mxu1 %v4862_v9 }
 0x21a   :  { %3303 = vmatpush1.bf16.msra.mxu0 %v4857_v10  ;;  %3385 = vmatpush1.bf16.msra.mxu1 %v4860_v12  ;;  %v4911_v12 = vld [vmem:[#allocation7 + $0x200] ss:$16 sps:$4 sm:$0xff]  }
 0x21b   :  { %3304 = vmatprep.subr.bf16.mxu0 %v4865_v14  ;;  %3386 = vmatprep.subr.bf16.mxu1 %v4868_v1  ;;  %v4914_v14 = vld [vmem:[#allocation7 + $0x208] ss:$16 sps:$4 sm:$0xff]  }
 0x21e   :  { %3305 = vmatpush1.bf16.msra.mxu0 %v4863_v16  ;;  %3387 = vmatpush1.bf16.msra.mxu1 %v4866_v17  ;;  %v4919_v16 = vld [vmem:[#allocation7 + $0x224] ss:$16 sps:$4 sm:$0xff]   ;;  %v4922_v17 = vld [vmem:[#allocation7 + $0x22c] ss:$16 sps:$4 sm:$0xff]  }
 0x21f   :  { %3306 = vmatprep.subr.bf16.mxu0 %v4871_v19  ;;  %3388 = vmatprep.subr.bf16.mxu1 %v4874_v20  ;;  %v4917_v20 = vld [vmem:[#allocation7 + $0x220] ss:$16 sps:$4 sm:$0xff]  }
 0x222   :  { %3307 = vmatpush1.bf16.msra.mxu0 %v4869_v21  ;;  %3389 = vmatpush1.bf16.msra.mxu1 %v4872_v22  ;;  %v4920_v21 = vld [vmem:[#allocation7 + $0x228] ss:$16 sps:$4 sm:$0xff]   ;;  %v4925_v22 = vld [vmem:[#allocation7 + $0x244] ss:$16 sps:$4 sm:$0xff]  }
 0x223   :  { %3308 = vmatprep.subr.bf16.mxu0 %v4877_v23  ;;  %3390 = vmatprep.subr.bf16.mxu1 %v4880_v24  ;;  %v4928_v23 = vld [vmem:[#allocation7 + $0x24c] ss:$16 sps:$4 sm:$0xff]   ;;  %v4923_v24 = vld [vmem:[#allocation7 + $0x240] ss:$16 sps:$4 sm:$0xff]  }
 0x226   :  { %3309 = vmatpush1.bf16.msra.mxu0 %v4875_v49  ;;  %3391 = vmatpush1.bf16.msra.mxu1 %v4878_v25  ;;  %v4926_v49 = vld [vmem:[#allocation7 + $0x248] ss:$16 sps:$4 sm:$0xff]   ;;  %v4931_v25 = vld [vmem:[#allocation7 + $0x264] ss:$16 sps:$4 sm:$0xff]  }
 0x227   :  { %3310 = vmatprep.subr.bf16.mxu0 %v4883_v26  ;;  %3392 = vmatprep.subr.bf16.mxu1 %v4886_v27  ;;  %v4934_v26 = vld [vmem:[#allocation7 + $0x26c] ss:$16 sps:$4 sm:$0xff]   ;;  %v4929_v27 = vld [vmem:[#allocation7 + $0x260] ss:$16 sps:$4 sm:$0xff]  }
 0x22a   :  { %3311 = vmatpush1.bf16.msra.mxu0 %v4881_v28  ;;  %3393 = vmatpush1.bf16.msra.mxu1 %v4884_v29  ;;  %v4932_v28 = vld [vmem:[#allocation7 + $0x268] ss:$16 sps:$4 sm:$0xff]   ;;  %v4937_v29 = vld [vmem:[#allocation7 + $0x284] ss:$16 sps:$4 sm:$0xff]  }
 0x22b   :  { %3312 = vmatprep.subr.bf16.mxu0 %v4889_v30  ;;  %3394 = vmatprep.subr.bf16.mxu1 %v4892_v31  ;;  %v4940_v30 = vld [vmem:[#allocation7 + $0x28c] ss:$16 sps:$4 sm:$0xff]   ;;  %v4935_v31 = vld [vmem:[#allocation7 + $0x280] ss:$16 sps:$4 sm:$0xff]  }
 0x22e   :  { %3313 = vmatpush1.bf16.msra.mxu0 %v4887_v33  ;;  %3395 = vmatpush1.bf16.msra.mxu1 %v4890_v34  ;;  %v4938_v33 = vld [vmem:[#allocation7 + $0x288] ss:$16 sps:$4 sm:$0xff]   ;;  %v4943_v34 = vld [vmem:[#allocation7 + $0x2a4] ss:$16 sps:$4 sm:$0xff]  }
 0x22f   :  { %3314 = vmatprep.subr.bf16.mxu0 %v4895_v2  ;;  %3396 = vmatprep.subr.bf16.mxu1 %v4898_v35  ;;  %v4946_v2 = vld [vmem:[#allocation7 + $0x2ac] ss:$16 sps:$4 sm:$0xff]   ;;  %v4941_v35 = vld [vmem:[#allocation7 + $0x2a0] ss:$16 sps:$4 sm:$0xff]  }
 0x232   :  { %3315 = vmatpush1.bf16.msra.mxu0 %v4893_v36  ;;  %3397 = vmatpush1.bf16.msra.mxu1 %v4896_v37  ;;  %v4944_v36 = vld [vmem:[#allocation7 + $0x2a8] ss:$16 sps:$4 sm:$0xff]   ;;  %v4949_v37 = vld [vmem:[#allocation7 + $0x2c4] ss:$16 sps:$4 sm:$0xff]  }
 0x233   :  { %3316 = vmatprep.subr.bf16.mxu0 %v4901_v38  ;;  %3398 = vmatprep.subr.bf16.mxu1 %v4904_v40  ;;  %v4952_v38 = vld [vmem:[#allocation7 + $0x2cc] ss:$16 sps:$4 sm:$0xff]   ;;  %v4947_v40 = vld [vmem:[#allocation7 + $0x2c0] ss:$16 sps:$4 sm:$0xff]  }
 0x236   :  { %3317 = vmatpush1.bf16.msra.mxu0 %v4899_v41  ;;  %3399 = vmatpush1.bf16.msra.mxu1 %v4902_v42  ;;  %v4950_v41 = vld [vmem:[#allocation7 + $0x2c8] ss:$16 sps:$4 sm:$0xff]   ;;  %v4955_v42 = vld [vmem:[#allocation7 + $0x2e4] ss:$16 sps:$4 sm:$0xff]  }
 0x237   :  { %3318 = vmatprep.subr.bf16.mxu0 %v4907_v44  ;;  %3400 = vmatprep.subr.bf16.mxu1 %v4910_v45  ;;  %v4958_v44 = vld [vmem:[#allocation7 + $0x2ec] ss:$16 sps:$4 sm:$0xff]   ;;  %v4953_v45 = vld [vmem:[#allocation7 + $0x2e0] ss:$16 sps:$4 sm:$0xff]  }
 0x23a   :  { %3319 = vmatpush1.bf16.msra.mxu0 %v4905_v46  ;;  %3401 = vmatpush1.bf16.msra.mxu1 %v4908_v47  ;;  %v4956_v46 = vld [vmem:[#allocation7 + $0x2e8] ss:$16 sps:$4 sm:$0xff]   ;;  %v4961_v47 = vld [vmem:[#allocation7 + $0x304] ss:$16 sps:$4 sm:$0xff]  }
 0x23b   :  { %3329 = vmatprep.subr.bf16.mxu0 %v4913_v48  ;;  %3411 = vmatprep.subr.bf16.mxu1 %v4916_v3  ;;  %v4964_v48 = vld [vmem:[#allocation7 + $0x30c] ss:$16 sps:$4 sm:$0xff]   ;;  %v4959_v3 = vld [vmem:[#allocation7 + $0x300] ss:$16 sps:$4 sm:$0xff]  }
 0x2d0   :  { %v2283_v56 = vpop.f32.mrb[8].mxu0  ;;  %v5370_v57 = vpop.f32.mrb[8].mxu1 }
 0x2d1   :  { %v2454_v59 = vpack.c.bf16 %v2283_v56, %v2283_v56  ;;  %v2285_v60 = vpop.f32.mrb[9].mxu0  ;;  %v2449_v61 = vpop.f32.mrb[9].mxu1  ;;  %v4974_v56 = vld [vmem:[#allocation7 + $0x348] ss:$16 sps:$4 sm:$0xff]  }
 0x2d2   :  { %v2455_v63 = vpack.c.bf16 %v2285_v60, %v2285_v60  ;;  %v2457_v43 = vpack.c.bf16 %v2449_v61, %v2449_v61  ;;  %v2287_v4 = vpop.f32.mrb[10].mxu0  ;;  %v2451_v5 = vpop.f32.mrb[10].mxu1  ;;  %v4977_v60 = vld [vmem:[#allocation7 + $0x360] ss:$16 sps:$4 sm:$0xff]   ;;  %v4980_v61 = vld [vmem:[#allocation7 + $0x368] ss:$16 sps:$4 sm:$0xff]  }
 0x2d3   :  { %v2512_v6 = vadd.bf16 %v2490_v55, %v2454_v59  ;;  %v2288_v7 = vpop.f32.mrb[11].mxu0  ;;  %v2452_v32 = vpop.f32.mrb[11].mxu1  ;;  %v4971_v55 = vld [vmem:[#allocation7 + $0x340] ss:$16 sps:$4 sm:$0xff]   ;;  %v4982_v59 = vld [vmem:[#allocation7 + $0x36c] ss:$16 sps:$4 sm:$0xff]   ;;  %v2482_v5 = vcombine.high %v5365_v39, %v5365_v39  ;;  %v2456_v39 = vpack.c.bf16 %v5370_v57, %v5370_v57 }
 0x2d4   :  { %v2513_v8 = vadd.bf16 %v2497_v58, %v2455_v63  ;;  %v2515_v9 = vadd.bf16 %v2511_v62, %v2457_v43  ;;  %v4979_v58 = vld [vmem:[#allocation7 + $0x364] ss:$16 sps:$4 sm:$0xff]   ;;  %v4988_v63 = vld [vmem:[#allocation7 + $0x38c] ss:$16 sps:$4 sm:$0xff]   ;;  %v4983_v43 = vld [vmem:[#allocation7 + $0x380] ss:$16 sps:$4 sm:$0xff]  }
 0x2d5   :  { %v2516_v1 = vmax.bf16 %v5171_v0, %v2512_v6  ;;  %v4985_v62 = vld [vmem:[#allocation7 + $0x384] ss:$16 sps:$4 sm:$0xff]   ;;  %v4986_v4 = vld [vmem:[#allocation7 + $0x388] ss:$16 sps:$4 sm:$0xff]   ;;  %v4994_v7 = vld [vmem:[#allocation7 + $0x3ac] ss:$16 sps:$4 sm:$0xff]  }
 0x2d6   :  { %v2517_v10 = vmax.bf16 %v5171_v0, %v2513_v8  ;;  %v2519_v19 = vmax.bf16 %v5171_v0, %v2515_v9  ;;  %v4991_v6 = vld [vmem:[#allocation7 + $0x3a4] ss:$16 sps:$4 sm:$0xff]   ;;  %v4989_v32 = vld [vmem:[#allocation7 + $0x3a0] ss:$16 sps:$4 sm:$0xff]   ;;  %v4992_v8 = vld [vmem:[#allocation7 + $0x3a8] ss:$16 sps:$4 sm:$0xff]   ;;  %v2499_v9 = vpack.i.b16 %v2482_v5, %v2482_v5 }
 0x2d8   :  { %3320 = vmatprep.mubr.bf16.mxu0 %v2517_v10  ;;  %3402 = vmatprep.mubr.bf16.mxu1 %v2517_v10  ;;  %v4997_v10 = vld [vmem:[#allocation7 + $0x3c4] ss:$16 sps:$4 sm:$0xff]  }
 0x2d9   :  { %3321 = vmatmul.mubr.bf16.vlgmr.msra.gmra.mrb[12].mxu0 %v2516_v1  ;;  %3403 = vmatmul.mubr.bf16.vlgmr.msra.gmra.mrb[12].mxu1 %v2516_v1  ;;  %v4998_v1 = vld [vmem:[#allocation7 + $0x3c8] ss:$16 sps:$4 sm:$0xff]  }
 0x2da   :  { %3330 = vmatpush1.bf16.msra.mxu0 %v4911_v12  ;;  %3412 = vmatpush1.bf16.msra.mxu1 %v4914_v14  ;;  %v5000_v12 = vld [vmem:[#allocation7 + $0x3cc] ss:$16 sps:$4 sm:$0xff]   ;;  %v4995_v14 = vld [vmem:[#allocation7 + $0x3c0] ss:$16 sps:$4 sm:$0xff]  }
 0x2db   :  { %3361 = vmatprep.mubr.bf16.mxu0 %v2519_v19  ;;  %3443 = vmatprep.mubr.bf16.mxu1 %v2519_v19  ;;  %v5006_v19 = vld [vmem:[#allocation7 + $0x3ec] ss:$16 sps:$4 sm:$0xff]  }
 0x2dc   :  { %3331 = vmatprep.subr.bf16.mxu0 %v4919_v16  ;;  %3413 = vmatprep.subr.bf16.mxu1 %v4922_v17  ;;  %v2504_v16 = vrot.slane %v2499_v9, %v5308_v18  ;;  %v5003_v17 = vld [vmem:[#allocation7 + $0x3e4] ss:$16 sps:$4 sm:$0xff]  }
 0x2de   :  { %3332 = vmatpush1.bf16.msra.mxu0 %v4917_v20  ;;  %3414 = vmatpush1.bf16.msra.mxu1 %v4920_v21  ;;  %v5001_v20 = vld [vmem:[#allocation7 + $0x3e0] ss:$16 sps:$4 sm:$0xff]   ;;  %v5004_v21 = vld [vmem:[#allocation7 + $0x3e8] ss:$16 sps:$4 sm:$0xff]  }
 0x2df   :  { %3333 = vmatprep.subr.bf16.mxu0 %v4925_v22  ;;  %3415 = vmatprep.subr.bf16.mxu1 %v4928_v23  ;;  %v2514_v22 = vadd.bf16 %v2504_v16, %v2456_v39  ;;  %v5007_v23 = vld [vmem:[#allocation8 + $0x40] sm:$0xff]  }
 0x2e1   :  { %v2518_v57 = vmax.bf16 %v5171_v0, %v2514_v22 }
 0x2e2   :  { %3334 = vmatpush1.bf16.msra.mxu0 %v4923_v24  ;;  %3416 = vmatpush1.bf16.msra.mxu1 %v4926_v49  ;;  %v5008_v24 = vld [vmem:[#allocation8 + $0xc0] sm:$0xff]  }
 0x2e3   :  { %3335 = vmatprep.subr.bf16.mxu0 %v4931_v25  ;;  %3417 = vmatprep.subr.bf16.mxu1 %v4934_v26  ;;  %v5009_v49 = vld [vmem:[#allocation8] sm:$0xff]   ;;  %v5011_v26 = vld [vmem:[#allocation8 + $0x48] sm:$0xff]  }
 0x2e4   :  { %v5010_v25 = vld [vmem:[#allocation8 + $0x80] sm:$0xff]  }
 0x2e6   :  { %3336 = vmatpush1.bf16.msra.mxu0 %v4929_v27  ;;  %3418 = vmatpush1.bf16.msra.mxu1 %v4932_v28  ;;  %v5012_v27 = vld [vmem:[#allocation8 + $0xc8] sm:$0xff]  }
 0x2e7   :  { %3337 = vmatprep.subr.bf16.mxu0 %v4937_v29  ;;  %3419 = vmatprep.subr.bf16.mxu1 %v4940_v30  ;;  %v5013_v28 = vld [vmem:[#allocation8 + $0x8] sm:$0xff]   ;;  %v5015_v30 = vld [vmem:[#allocation8 + $0x50] sm:$0xff]  }
 0x2e8   :  { %v5014_v29 = vld [vmem:[#allocation8 + $0x88] sm:$0xff]  }
 0x2ea   :  { %3338 = vmatpush1.bf16.msra.mxu0 %v4935_v31  ;;  %3420 = vmatpush1.bf16.msra.mxu1 %v4938_v33  ;;  %v5016_v31 = vld [vmem:[#allocation8 + $0xd0] sm:$0xff]  }
 0x2eb   :  { %3339 = vmatprep.subr.bf16.mxu0 %v4943_v34  ;;  %3421 = vmatprep.subr.bf16.mxu1 %v4946_v2  ;;  %v5017_v33 = vld [vmem:[#allocation8 + $0x10] sm:$0xff]   ;;  %v5019_v2 = vld [vmem:[#allocation8 + $0x58] sm:$0xff]  }
 0x2ec   :  { %v5018_v34 = vld [vmem:[#allocation8 + $0x90] sm:$0xff]  }
 0x2ee   :  { %3340 = vmatpush1.bf16.msra.mxu0 %v4941_v35  ;;  %3422 = vmatpush1.bf16.msra.mxu1 %v4944_v36  ;;  %v5020_v35 = vld [vmem:[#allocation8 + $0xd8] sm:$0xff]  }
 0x2ef   :  { %3341 = vmatprep.subr.bf16.mxu0 %v4949_v37  ;;  %3423 = vmatprep.subr.bf16.mxu1 %v4952_v38  ;;  %v5021_v36 = vld [vmem:[#allocation8 + $0x18] sm:$0xff]   ;;  %v5023_v38 = vld [vmem:[#allocation8 + $0x60] sm:$0xff]  }
 0x2f0   :  { %v5022_v37 = vld [vmem:[#allocation8 + $0x98] sm:$0xff]  }
 0x2f2   :  { %3342 = vmatpush1.bf16.msra.mxu0 %v4947_v40  ;;  %3424 = vmatpush1.bf16.msra.mxu1 %v4950_v41  ;;  %v5024_v40 = vld [vmem:[#allocation8 + $0xe0] sm:$0xff]  }
 0x2f3   :  { %3343 = vmatprep.subr.bf16.mxu0 %v4955_v42  ;;  %3425 = vmatprep.subr.bf16.mxu1 %v4958_v44  ;;  %v5025_v41 = vld [vmem:[#allocation8 + $0x20] sm:$0xff]   ;;  %v5027_v44 = vld [vmem:[#allocation8 + $0x68] sm:$0xff]  }
 0x2f4   :  { %v5026_v42 = vld [vmem:[#allocation8 + $0xa0] sm:$0xff]  }
 0x2f6   :  { %3344 = vmatpush1.bf16.msra.mxu0 %v4953_v45  ;;  %3426 = vmatpush1.bf16.msra.mxu1 %v4956_v46  ;;  %v5028_v45 = vld [vmem:[#allocation8 + $0xe8] sm:$0xff]  }
 0x2f7   :  { %3345 = vmatprep.subr.bf16.mxu0 %v4961_v47  ;;  %3427 = vmatprep.subr.bf16.mxu1 %v4964_v48  ;;  %v5029_v46 = vld [vmem:[#allocation8 + $0x28] sm:$0xff]   ;;  %v5031_v48 = vld [vmem:[#allocation8 + $0x70] sm:$0xff]  }
 0x2f8   :  { %v5030_v47 = vld [vmem:[#allocation8 + $0xa8] sm:$0xff]  }
 0x2fa   :  { %3346 = vmatpush1.bf16.msra.mxu0 %v4959_v3  ;;  %3428 = vmatpush1.bf16.msra.mxu1 %v4962_v50  ;;  %v5032_v3 = vld [vmem:[#allocation8 + $0xf0] sm:$0xff]  }
 0x2fb   :  { %3347 = vmatprep.subr.bf16.mxu0 %v4967_v51  ;;  %3429 = vmatprep.subr.bf16.mxu1 %v4970_v52  ;;  %v5033_v50 = vld [vmem:[#allocation8 + $0x30] sm:$0xff]   ;;  %v5035_v52 = vld [vmem:[#allocation8 + $0x78] sm:$0xff]  }
 0x2fc   :  { %v5034_v51 = vld [vmem:[#allocation8 + $0xb0] sm:$0xff]  }
 0x2fe   :  { %3348 = vmatpush1.bf16.msra.mxu0 %v4965_v53  ;;  %3430 = vmatpush1.bf16.msra.mxu1 %v4968_v54  ;;  %v5036_v53 = vld [vmem:[#allocation8 + $0xf8] sm:$0xff]  }
 0x2ff   :  { %3349 = vmatprep.subr.bf16.mxu0 %v4973_v15  ;;  %3431 = vmatprep.subr.bf16.mxu1 %v4976_v13  ;;  %v5037_v54 = vld [vmem:[#allocation8 + $0x38] sm:$0xff]  }
 0x300   :  { %v5038_v15 = vld [vmem:[#allocation8 + $0xb8] sm:$0xff]  }
 0x301   :  { %v4306_v13 = vld.sshfl [vmem:[%s5417_s6] sm:$0x33 pattern:$0x75316420] }
 0x302   :  { %3350 = vmatpush1.bf16.msra.mxu0 %v4971_v55  ;;  %3432 = vmatpush1.bf16.msra.mxu1 %v4974_v56  ;;  %v3465_v55 = vcombine.high %v4306_v13, %v4306_v13  ;;  %v3472_v56 = vrot.slane %v4306_v13, %v5296_v11 }
 0x303   :  { %3351 = vmatprep.subr.bf16.mxu0 %v4979_v58  ;;  %3433 = vmatprep.subr.bf16.mxu1 %v4982_v59 }
 0x304   :  { %v3479_v58 = vrot.slane %v3465_v55, %v5296_v11  ;;  %v3480_v59 = vcombine.high %v3472_v56, %v3472_v56 }
 0x306   :  { %3352 = vmatpush1.bf16.msra.mxu0 %v4977_v60  ;;  %3434 = vmatpush1.bf16.msra.mxu1 %v4980_v61  ;;  %v3481_v60 = vcombine.high %v3479_v58, %v3479_v58  ;;  %v3483_v61 = vpack.i.b16 %v3472_v56, %v3472_v56 }
 0x307   :  { %3353 = vmatprep.subr.bf16.mxu0 %v4985_v62  ;;  %3435 = vmatprep.subr.bf16.mxu1 %v4988_v63  ;;  %v3497_v62 = vpack.i.b16 %v3480_v59, %v3480_v59  ;;  %v3490_v63 = vpack.i.b16 %v3479_v58, %v3479_v58 }
 0x309   :  { %v3502_v5 = vrot.slane %v3497_v62, %v5308_v18 }
 0x30a   :  { %3354 = vmatpush1.bf16.msra.mxu0 %v4983_v43  ;;  %3436 = vmatpush1.bf16.msra.mxu1 %v4986_v4  ;;  %v3504_v43 = vpack.i.b16 %v3481_v60, %v3481_v60  ;;  %v3488_v4 = vrot.slane %v3483_v61, %v5308_v18 }
 0x30b   :  { %3355 = vmatprep.subr.bf16.mxu0 %v4991_v6  ;;  %3437 = vmatprep.subr.bf16.mxu1 %v4994_v7 }
 0x30e   :  { %3356 = vmatpush1.bf16.msra.mxu0 %v4989_v32  ;;  %3438 = vmatpush1.bf16.msra.mxu1 %v4992_v8  ;;  %v3495_v32 = vrot.slane %v3490_v63, %v5308_v18  ;;  %v3509_v8 = vrot.slane %v3504_v43, %v5308_v18 }
 0x30f   :  { %3357 = vmatprep.subr.bf16.mxu0 %v4997_v10  ;;  %3439 = vmatprep.subr.bf16.mxu1 %v5000_v12 }
 0x312   :  { %3358 = vmatpush1.bf16.msra.mxu0 %v4995_v14  ;;  %3440 = vmatpush1.bf16.msra.mxu1 %v4998_v1 }
 0x313   :  { %3359 = vmatprep.subr.bf16.mxu0 %v5003_v17  ;;  %3441 = vmatprep.subr.bf16.mxu1 %v5006_v19 }
 0x316   :  { %3360 = vmatpush1.bf16.msra.mxu0 %v5001_v20  ;;  %3442 = vmatpush1.bf16.msra.mxu1 %v5004_v21 }
 0x317   :  { %4341 = vmatprep.subr.bf16.mxu0 %v5007_v23  ;;  %4363 = vmatprep.subr.bf16.mxu1 %v5008_v24 }
 0x319   :  { %3362 = vmatmul.mubr.bf16.vlgmr.msra.gmra.mrb[12].mxu0 %v2518_v57  ;;  %3444 = vmatmul.mubr.bf16.vlgmr.msra.gmra.mrb[12].mxu1 %v2518_v57 }
 0x31a   :  { %4342 = vmatpush3.bf16.msra.mxu0 %v5009_v49  ;;  %4364 = vmatpush3.bf16.msra.mxu1 %v5010_v25 }
 0x31b   :  { %4343 = vmatprep.subr.bf16.mxu0 %v5011_v26  ;;  %4365 = vmatprep.subr.bf16.mxu1 %v5012_v27  ;;  %v4307_v27 = vld [vmem:[%s5419_s8] ss:$0 sm:$0xff]  ;;  %s5131_s8 = scalar_lea.vmem %s3875_s26, 128 }
 0x31c   :  { %p5132_p4 = scmp.ne.s32.totalorder %s3875_s26, %s5131_s8  ;;  %p5137_p6 = scmp.lt.s32.totalorder %s5131_s8, %s5131_s8 }
 0x31e   :  { %4344 = vmatpush3.bf16.msra.mxu0 %v5013_v28  ;;  %4366 = vmatpush3.bf16.msra.mxu1 %v5014_v29  ;;  %p5138_p7 = por %p5137_p6, %p5136_p5 }
 0x31f   :  { %4345 = vmatprep.subr.bf16.mxu0 %v5015_v30  ;;  %4367 = vmatprep.subr.bf16.mxu1 %v5016_v31 }
 0x320   :  { %p5139_p8 = pnand %p5138_p7, %p5132_p4 }
 0x322   :  { %4346 = vmatpush3.bf16.msra.mxu0 %v5017_v33  ;;  %4368 = vmatpush3.bf16.msra.mxu1 %v5018_v34 }
 0x323   :  { %4347 = vmatprep.subr.bf16.mxu0 %v5019_v2  ;;  %4369 = vmatprep.subr.bf16.mxu1 %v5020_v35 }
 0x326   :  { %4348 = vmatpush3.bf16.msra.mxu0 %v5021_v36  ;;  %4370 = vmatpush3.bf16.msra.mxu1 %v5022_v37 }
 0x327   :  { %4349 = vmatprep.subr.bf16.mxu0 %v5023_v38  ;;  %4371 = vmatprep.subr.bf16.mxu1 %v5024_v40 }
 0x32a   :  { %4350 = vmatpush3.bf16.msra.mxu0 %v5025_v41  ;;  %4372 = vmatpush3.bf16.msra.mxu1 %v5026_v42 }
 0x32b   :  { %4351 = vmatprep.subr.bf16.mxu0 %v5027_v44  ;;  %4373 = vmatprep.subr.bf16.mxu1 %v5028_v45 }
 0x32e   :  { %4352 = vmatpush3.bf16.msra.mxu0 %v5029_v46  ;;  %4374 = vmatpush3.bf16.msra.mxu1 %v5030_v47 }
 0x32f   :  { %4353 = vmatprep.subr.bf16.mxu0 %v5031_v48  ;;  %4375 = vmatprep.subr.bf16.mxu1 %v5032_v3 }
 0x332   :  { %4354 = vmatpush3.bf16.msra.mxu0 %v5033_v50  ;;  %4376 = vmatpush3.bf16.msra.mxu1 %v5034_v51 }
 0x333   :  { %4355 = vmatprep.subr.bf16.mxu0 %v5035_v52  ;;  %4377 = vmatprep.subr.bf16.mxu1 %v5036_v53 }
 0x336   :  { %4356 = vmatpush3.bf16.msra.mxu0 %v5037_v54  ;;  %4378 = vmatpush3.bf16.msra.mxu1 %v5038_v15 }
 0x3ec   :  { %v3363_v6 = vpop.f32.mrb[12].mxu0  ;;  %v3445_v7 = vpop.f32.mrb[12].mxu1 }
 0x3ed   :  { %v3452_v9 = vpack.c.bf16 %v3363_v6, %v3363_v6  ;;  %v3454_v10 = vpack.c.bf16 %v3445_v7, %v3445_v7  ;;  %v3365_v12 = vpop.f32.mrb[13].mxu0  ;;  %v3447_v11 = vpop.f32.mrb[13].mxu1 }
 0x3ee   :  { %v3453_v14 = vpack.c.bf16 %v3365_v12, %v3365_v12  ;;  %v3455_v1 = vpack.c.bf16 %v3447_v11, %v3447_v11  ;;  %v3367_v39 = vpop.f32.mrb[14].mxu0  ;;  %v3449_v16 = vpop.f32.mrb[14].mxu1 }
 0x3ef   :  { %v3510_v17 = vadd.bf16 %v3488_v4, %v3452_v9  ;;  %v3512_v19 = vadd.bf16 %v3502_v5, %v3454_v10  ;;  %v3368_v20 = vpop.f32.mrb[15].mxu0  ;;  %v3450_v21 = vpop.f32.mrb[15].mxu1 }
 0x3f0   :  { %v3511_v22 = vadd.bf16 %v3495_v32, %v3453_v14  ;;  %v3513_v23 = vadd.bf16 %v3509_v8, %v3455_v1 }
 0x3f1   :  { %v3514_v18 = vmax.bf16 %v5171_v0, %v3510_v17  ;;  %v3516_v25 = vmax.bf16 %v5171_v0, %v3512_v19 }
 0x3f2   :  { %v3515_v24 = vmax.bf16 %v5171_v0, %v3511_v22  ;;  %v3517_v49 = vmax.bf16 %v5171_v0, %v3513_v23 }
 0x3f4   :  { %3813 = vmatprep.mubr.bf16.mxu0 %v3515_v24  ;;  %3853 = vmatprep.mubr.bf16.mxu1 %v3517_v49 }
 0x3f5   :  { %3814 = vmatmul.mubr.bf16.vlgmr.msra.gmra.mrb[16].mxu0 %v3514_v18  ;;  %3854 = vmatmul.mubr.bf16.vlgmr.msra.gmra.mrb[16].mxu1 %v3516_v25 }
 0x4c8   :  { %v4357_v57 = vpop.f32.mrb[16].mxu0  ;;  %v4379_v26 = vpop.f32.mrb[16].mxu1 }
 0x4c9   :  { %v4358_v28 = vpop.f32.mrb[17].mxu0  ;;  %v4380_v29 = vpop.f32.mrb[17].mxu1 }
 0x4ca   :  { %v4359_v30 = vadd.f32 %v4358_v28, %v4357_v57  ;;  %v4381_v31 = vadd.f32 %v4380_v29, %v4379_v26  ;;  %v4360_v33 = vpop.f32.mrb[18].mxu0  ;;  %v4382_v34 = vpop.f32.mrb[18].mxu1 }
 0x4cb   :  { %v4361_v2 = vpop.f32.mrb[19].mxu0  ;;  %v4383_v35 = vpop.f32.mrb[19].mxu1 }
 0x4cc   :  { %v3816_v36 = vadd.f32 %v4359_v30, %v4307_v27 }
 0x4ce   :  { %v3856_v0 = vadd.f32 %v4381_v31, %v3816_v36 }
 0x4d0   :  { %v4340_v37 = vmul.f32 -1.442695, %v3856_v0 }
 0x4d2   :  { %5039 = vpow2.f32 %v4340_v37 }
 0x4dc   :  { %v5040_v38 = vpop.eup %5039 }
 0x4dd   :  { %v3864_v40 = vadd.f32 1.0, %v5040_v38 }
 0x4df   :  { %5041 = vrcp.f32 %v3864_v40 }
 0x4e9   :  { %v5042_v41 = vpop.eup %5041 }
 0x4ea   :  { %3867 = vst [vmem:[#allocation10] sm:$0xff] %v5042_v41 }
 0x4eb   :  { %5142 = shalt.err (!%p5139_p8)
}
 0x4ec   :  { %s5143_s1 = scalar_lea.hbm %s5420_s9, 128 }
 0x4ed   :  { %p5144_p9 = scmp.ne.s32.totalorder %s5420_s9, %s5143_s1  ;;  %p5147_p10 = scmp.lt.u32.totalorder %s5143_s1, %s5420_s9 }
 0x4ef   :  { %p5149_p11 = pnand %p5147_p10, %p5144_p9 }
 0x4f1   :  { %5152 = shalt.err (!%p5149_p11)
}
 0x4f2   :  { %3877 = dma.vmem_to_hbm [thread:$0]  %s3875_s26, 128, %s5420_s9, [#allocation4]  }
 0x4f3   :  { %5159 = dma.done.wait [#allocation4], 128  }
 0x4f4   :  { %5160 = vsyncadd [#allocation4], 4294967168 }
 0x4f5   :  { %3881 = vsyncpa [#allocation3], 1 }
 0x4f6   :  { %3882 = vsyncpa [#allocation6], 1 }
 0x4f7   :  { %3883 = vsyncpa [#allocation9], 1 }
 0x4f8   :  { %3884 = vsyncpa [#allocation4], 1 }

</bundles_post_ra>
